<compile_context>
chip_gen: v7x
topology: tpu7x:2x2x1
jax: 0.10.0
libtpu: 0.0.40
codegen_flags: <defaults>
</compile_context>

<pallas_src>
import functools

import jax
import jax.numpy as jnp
from jax import lax
from jax.experimental import pallas as pl
from jax.experimental.pallas import tpu as pltpu


_LANE = 128   # vreg lane width (last dim)
_SUBLANE = 8  # f32 sublane count (second-to-last dim)


def _round_up(x, m):
    return (x + m - 1) // m * m


def _pad_axis(a, axis, target):
    pad = target - a.shape[axis]
    if pad == 0:
        return a
    widths = [(0, 0)] * a.ndim
    widths[axis] = (0, pad)
    return jnp.pad(a, widths)


def _mlp_kernel(*refs, n_hidden_layers, leaky_relu_coef, row_chunk, n_chunks):
    """One batch-tile of the full MLP forward pass (row-chunked inside)."""
    if n_hidden_layers > 0:
        (x_ref, w_in_ref, b_in_ref, w_hid_ref, b_hid_ref,
         w_out_ref, b_out_ref, o_ref) = refs
    else:
        x_ref, w_in_ref, b_in_ref, w_out_ref, b_out_ref, o_ref = refs
        w_hid_ref = b_hid_ref = None

    cdt = w_in_ref.dtype  # MXU operand dtype (f32 or bf16); accumulation is f32.

    def leaky_relu(h):
        return jnp.where(h >= 0, h, leaky_relu_coef * h)

    def run_rows(x_blk):
        # Input layer + LeakyReLU.
        h = jnp.dot(x_blk.astype(cdt), w_in_ref[...],
                    preferred_element_type=jnp.float32)
        h = leaky_relu(h + b_in_ref[...])
        # Hidden layers: rolled loop indexing one (H, H) weight per iteration so
        # live ranges stay bounded; unrolled for short fixed depths (LLO vis).
        if n_hidden_layers > 0:
            def body(i, h):
                w = w_hid_ref[i]      # (H, H)
                b = b_hid_ref[i]      # (1, H) -> broadcasts over rows
                h = jnp.dot(h.astype(cdt), w, preferred_element_type=jnp.float32)
                return leaky_relu(h + b)
            h = lax.fori_loop(0, n_hidden_layers, body, h,
                              unroll=(n_hidden_layers <= 4))
        # Output layer (no activation).
        return jnp.dot(h.astype(cdt), w_out_ref[...],
                       preferred_element_type=jnp.float32) + b_out_ref[...]

    if n_chunks == 1:
        o_ref[...] = run_rows(x_ref[...]).astype(o_ref.dtype)
    else:
        # Process the batch tile in 128-row sub-chunks to bound vreg pressure
        # (a fori_loop — not a Python for — so live ranges really are bounded).
        def chunk_body(c, carry):
            r0 = pl.multiple_of(c * row_chunk, row_chunk)
            rows = x_ref[pl.ds(r0, row_chunk), :]
            o_ref[pl.ds(r0, row_chunk), :] = run_rows(rows).astype(o_ref.dtype)
            return carry
        lax.fori_loop(0, n_chunks, chunk_body, 0, unroll=(n_chunks <= 4))


def model_perceptron_forward(x, params, *, n_hidden_layers, leaky_relu_coef,
                             batch_tile=512, weight_dtype=None):
    """Pallas forward for ModelPerceptron.  x: (B, dim_input) float32."""
    w_in, b_in, w_hid, b_hid, w_out, b_out = params
    B, dim_input = x.shape
    dim_hidden = w_in.shape[1]
    dim_output = w_out.shape[1]

    wdt = jnp.dtype(weight_dtype) if weight_dtype is not None else w_in.dtype

    # Hidden width stays lane-dense (padding is inert through matmul/bias/relu
    # and never touches HBM per-step since hidden activations live in VMEM).
    dh_p = _round_up(dim_hidden, _LANE)
    # Keep the TRUE output width when it is small: 32x fewer output HBM bytes
    # beats the masked-store penalty in this mem-bound regime. Pad only when
    # dim_output is already at least one lane-tile wide.
    dout_p = _round_up(dim_output, _LANE) if dim_output >= _LANE else dim_output

    # Batch tiling: at least two grid tiles (so ("parallel",) actually shards
    # across both v7x TensorCores); when the tile is >=128 rows keep it a
    # multiple of 128 so in-kernel row chunks are uniform.
    half = _round_up(max(-(-B // 2), 1), _SUBLANE)
    tb = min(_round_up(batch_tile, _SUBLANE), half)
    if tb >= 128:
        tb = (tb // 128) * 128
    B_pad = _round_up(B, tb)
    grid = (B_pad // tb,)
    row_chunk = 128 if (tb > 128 and tb % 128 == 0) else tb
    n_chunks = tb // row_chunk

    # No feature-dim padding of x (block last dim == full array dim is legal).
    x_p = _pad_axis(x, 0, B_pad)
    w_in_p = _pad_axis(w_in, 1, dh_p).astype(wdt)
    b_in_p = _pad_axis(b_in, 1, dh_p).astype(jnp.float32)
    w_out_p = _pad_axis(_pad_axis(w_out, 0, dh_p), 1, dout_p).astype(wdt)
    b_out_p = _pad_axis(b_out, 1, dout_p).astype(jnp.float32)

    # Weights/biases have a constant index_map -> single-buffer them.
    resident = pl.Buffered(1)

    in_specs = [
        pl.BlockSpec((tb, dim_input), lambda i: (i, 0)),       # x streams/step
        pl.BlockSpec((dim_input, dh_p), lambda i: (0, 0), pipeline_mode=resident),
        pl.BlockSpec((1, dh_p), lambda i: (0, 0), pipeline_mode=resident),
    ]
    args = [x_p, w_in_p, b_in_p]

    if n_hidden_layers > 0:
        w_hid_p = _pad_axis(_pad_axis(w_hid, 1, dh_p), 2, dh_p).astype(wdt)
        b_hid_p = _pad_axis(b_hid, 2, dh_p).astype(jnp.float32)
        in_specs += [
            pl.BlockSpec((n_hidden_layers, dh_p, dh_p), lambda i: (0, 0, 0),
                         pipeline_mode=resident),
            pl.BlockSpec((n_hidden_layers, 1, dh_p), lambda i: (0, 0, 0),
                         pipeline_mode=resident),
        ]
        args += [w_hid_p, b_hid_p]
    # (n_hidden_layers == 0: no dummy hidden-weight DMA / VMEM at all.)

    in_specs += [
        pl.BlockSpec((dh_p, dout_p), lambda i: (0, 0), pipeline_mode=resident),
        pl.BlockSpec((1, dout_p), lambda i: (0, 0), pipeline_mode=resident),
    ]
    args += [w_out_p, b_out_p]

    # VMEM budget: weights/biases single-buffered, x/out double-buffered by the
    # pipeline, plus in-kernel activation chunks.
    w_item = jnp.dtype(wdt).itemsize
    weight_bytes = (dim_input * dh_p + n_hidden_layers * dh_p * dh_p
                    + dh_p * dout_p) * w_item
    bias_bytes = ((n_hidden_layers + 1) * dh_p + dout_p) * 4
    io_bytes = 2 * tb * (dim_input + dout_p) * 4
    act_bytes = 2 * row_chunk * dh_p * 4
    est = weight_bytes + bias_bytes + io_bytes + act_bytes

    cap = 64 << 20  # conservative fallback (v7x physical VMEM per TC)
    try:
        cap = int(getattr(pltpu.get_tpu_info(), "vmem_capacity_bytes", cap))
    except Exception:
        pass
    ceiling = (cap // 5) * 4  # ~20% headroom for Mosaic scratch / semaphores
    vmem_limit = int(min(max(est + (8 << 20), 32 << 20), ceiling))
    # TODO(synk): if the resident hidden-weight stack exceeds the ceiling
    # (deep/wide MLPs, esp. on v7x's 64 MiB VMEM), stream w_hid one layer at a
    # time via memory_space=pl.ANY + double-buffered pltpu.make_async_copy.

    kernel = functools.partial(
        _mlp_kernel,
        n_hidden_layers=n_hidden_layers,
        leaky_relu_coef=leaky_relu_coef,
        row_chunk=row_chunk,
        n_chunks=n_chunks,
    )

    out_p = pl.pallas_call(
        kernel,
        out_shape=jax.ShapeDtypeStruct((B_pad, dout_p), jnp.float32),
        grid_spec=pltpu.PrefetchScalarGridSpec(
            num_scalar_prefetch=0,
            grid=grid,
            in_specs=in_specs,
            out_specs=pl.BlockSpec((tb, dout_p), lambda i: (i, 0)),
        ),
        compiler_params=pltpu.CompilerParams(
            dimension_semantics=("parallel",),
            vmem_limit_bytes=vmem_limit,
        ),
    )(*args)

    out = out_p
    if B_pad != B:
        out = out[:B]
    if dout_p != dim_output:
        out = out[:, :dim_output]
    return out


def init_params(key, dim_input, dim_output, dim_hidden, n_hidden_layers):
    """Deterministic synthetic init (PyTorch-like uniform fan-in bounds)."""
    keys = jax.random.split(key, 6)

    def uniform(k, shape, fan_in):
        bound = 1.0 / jnp.sqrt(fan_in)
        return jax.random.uniform(k, shape, jnp.float32, -bound, bound)

    # Stored as (in, out) == torch weight (out, in) transposed.
    w_in = uniform(keys[0], (dim_input, dim_hidden), dim_input)
    b_in = uniform(keys[1], (1, dim_hidden), dim_input)
    w_hid = uniform(keys[2], (n_hidden_layers, dim_hidden, dim_hidden), dim_hidden)
    b_hid = uniform(keys[3], (n_hidden_layers, 1, dim_hidden), dim_hidden)
    w_out = uniform(keys[4], (dim_hidden, dim_output), dim_hidden)
    b_out = uniform(keys[5], (1, dim_output), dim_hidden)
    return (w_in, b_in, w_hid, b_hid, w_out, b_out)


def reference_forward(x, params, *, n_hidden_layers, leaky_relu_coef):
    """Pure-JAX reference matching torch semantics exactly."""
    w_in, b_in, w_hid, b_hid, w_out, b_out = params

    def lrelu(h):
        return jnp.where(h >= 0, h, leaky_relu_coef * h)

    h = lrelu(x @ w_in + b_in)
    for i in range(n_hidden_layers):
        h = lrelu(h @ w_hid[i] + b_hid[i])
    return h @ w_out + b_out


if __name__ == "__main__":
    batch = 512
    dim_input = 8
    dim_hidden = 32
    dim_output = 4
    n_hidden_layers = 2
    leaky_relu_coef = 0.15

    key = jax.random.PRNGKey(0)
    k_x, k_p = jax.random.split(key)
    x = jax.random.normal(k_x, (batch, dim_input), dtype=jnp.float32)
    params = init_params(k_p, dim_input, dim_output, dim_hidden, n_hidden_layers)

    ref = reference_forward(
        x, params, n_hidden_layers=n_hidden_layers,
        leaky_relu_coef=leaky_relu_coef)

    # f32 path, default batch_tile=512 -> tb=256, grid of 2 parallel tiles,
    # two 128-row chunks per tile.
    out = model_perceptron_forward(
        x, params, n_hidden_layers=n_hidden_layers,
        leaky_relu_coef=leaky_relu_coef)
    out = jax.block_until_ready(out)
    assert out.shape == (batch, dim_output)
    assert jnp.allclose(out, ref, atol=1e-4, rtol=1e-4)

    # bf16 MXU operands (f32 accumulation) — loose check against f32 reference.
    out_bf16 = model_perceptron_forward(
        x, params, n_hidden_layers=n_hidden_layers,
        leaky_relu_coef=leaky_relu_coef, weight_dtype=jnp.bfloat16)
    out_bf16 = jax.block_until_ready(out_bf16)
    assert jnp.allclose(out_bf16, ref, atol=1e-1, rtol=1e-1)

    # n_hidden_layers == 0 path (no hidden-weight DMA at all), small batch.
    params0 = init_params(k_p, dim_input, dim_output, dim_hidden, 0)
    out0 = model_perceptron_forward(
        x[:64], params0, n_hidden_layers=0,
        leaky_relu_coef=leaky_relu_coef, batch_tile=64)
    out0 = jax.block_until_ready(out0)
    ref0 = reference_forward(
        x[:64], params0, n_hidden_layers=0, leaky_relu_coef=leaky_relu_coef)
    assert jnp.allclose(out0, ref0, atol=1e-4, rtol=1e-4)

    print("KERNEL_OK")
</pallas_src>

<mosaic_0001>
module attributes {stable_mosaic.version = 11 : i64} {
  func.func @_mlp_kernel(%arg0: i32, %arg1: memref<256x8xf32, #tpu.memory_space<vmem>>, %arg2: memref<8x128xf32, #tpu.memory_space<vmem>>, %arg3: memref<1x128xf32, #tpu.memory_space<vmem>>, %arg4: memref<2x128x128xf32, #tpu.memory_space<vmem>>, %arg5: memref<2x1x128xf32, #tpu.memory_space<vmem>>, %arg6: memref<128x4xf32, #tpu.memory_space<vmem>>, %arg7: memref<1x4xf32, #tpu.memory_space<vmem>>, %arg8: memref<256x4xf32, #tpu.memory_space<vmem>>) attributes {dimension_semantics = [#tpu.dimension_semantics<parallel>], iteration_bounds = array<i64: 2>, scalar_prefetch = 0 : i64, scratch_operands = 0 : i64, tpu.core_type = #tpu.core_type<tc>, window_params = [{transform_indices = @transform_0, window_bounds = array<i64: 256, 8>}, {pipeline_mode = #tpu.pipeline_mode<synchronous>, transform_indices = @transform_1, window_bounds = array<i64: 8, 128>}, {pipeline_mode = #tpu.pipeline_mode<synchronous>, transform_indices = @transform_2, window_bounds = array<i64: 1, 128>}, {pipeline_mode = #tpu.pipeline_mode<synchronous>, transform_indices = @transform_3, window_bounds = array<i64: 2, 128, 128>}, {pipeline_mode = #tpu.pipeline_mode<synchronous>, transform_indices = @transform_4, window_bounds = array<i64: 2, 1, 128>}, {pipeline_mode = #tpu.pipeline_mode<synchronous>, transform_indices = @transform_5, window_bounds = array<i64: 128, 4>}, {pipeline_mode = #tpu.pipeline_mode<synchronous>, transform_indices = @transform_6, window_bounds = array<i64: 1, 4>}, {transform_indices = @transform_7, window_bounds = array<i64: 256, 4>}]} {
    %c0_i32 = arith.constant 0 : i32
    %c128_i32 = arith.constant 128 : i32
    %0 = arith.muli %c0_i32, %c128_i32 : i32
    %1 = tpu.assume_multiple %0, 128 : i32
    %2 = arith.index_cast %1 : i32 to index
    %c0 = arith.constant 0 : index
    %3 = vector.load %arg1[%2, %c0] : memref<256x8xf32, #tpu.memory_space<vmem>>, vector<128x8xf32>
    %c0_0 = arith.constant 0 : index
    %c0_1 = arith.constant 0 : index
    %4 = vector.load %arg2[%c0_0, %c0_1] : memref<8x128xf32, #tpu.memory_space<vmem>>, vector<8x128xf32>
    %cst = arith.constant dense<0.000000e+00> : vector<128x128xf32>
    %5 = tpu.matmul %3, %4, %cst {dimension_numbers = #tpu.dot_dimension_numbers<[1], [0], [0], [1], [0, 0, 1, 1], [], []>} : vector<128x8xf32>, vector<8x128xf32>, vector<128x128xf32> -> vector<128x128xf32>
    %c0_2 = arith.constant 0 : index
    %c0_3 = arith.constant 0 : index
    %6 = vector.load %arg3[%c0_2, %c0_3] : memref<1x128xf32, #tpu.memory_space<vmem>>, vector<1x128xf32>
    %7 = vector.broadcast %6 : vector<1x128xf32> to vector<128x128xf32>
    %8 = arith.addf %5, %7 : vector<128x128xf32>
    %cst_4 = arith.constant 0.000000e+00 : f32
    %9 = vector.broadcast %cst_4 : f32 to vector<128x128xf32>
    %10 = arith.cmpf oge, %8, %9 : vector<128x128xf32>
    %cst_5 = arith.constant 1.500000e-01 : f32
    %11 = vector.broadcast %cst_5 : f32 to vector<128x128xf32>
    %12 = arith.mulf %11, %8 : vector<128x128xf32>
    %13 = arith.select %10, %8, %12 : vector<128x128xi1>, vector<128x128xf32>
    %c0_i32_6 = arith.constant 0 : i32
    %14 = arith.index_cast %c0_i32_6 : i32 to index
    %c0_7 = arith.constant 0 : index
    %c0_8 = arith.constant 0 : index
    %15 = vector.load %arg4[%14, %c0_7, %c0_8] : memref<2x128x128xf32, #tpu.memory_space<vmem>>, vector<1x128x128xf32>
    %16 = vector.shape_cast %15 : vector<1x128x128xf32> to vector<128x128xf32>
    %17 = arith.index_cast %c0_i32_6 : i32 to index
    %c0_9 = arith.constant 0 : index
    %c0_10 = arith.constant 0 : index
    %18 = vector.load %arg5[%17, %c0_9, %c0_10] : memref<2x1x128xf32, #tpu.memory_space<vmem>>, vector<1x1x128xf32>
    %19 = vector.shape_cast %18 : vector<1x1x128xf32> to vector<1x128xf32>
    %cst_11 = arith.constant dense<0.000000e+00> : vector<128x128xf32>
    %20 = tpu.matmul %13, %16, %cst_11 {dimension_numbers = #tpu.dot_dimension_numbers<[1], [0], [0], [1], [0, 0, 1, 1], [], []>} : vector<128x128xf32>, vector<128x128xf32>, vector<128x128xf32> -> vector<128x128xf32>
    %21 = vector.broadcast %19 : vector<1x128xf32> to vector<128x128xf32>
    %22 = arith.addf %20, %21 : vector<128x128xf32>
    %cst_12 = arith.constant 0.000000e+00 : f32
    %23 = vector.broadcast %cst_12 : f32 to vector<128x128xf32>
    %24 = arith.cmpf oge, %22, %23 : vector<128x128xf32>
    %cst_13 = arith.constant 1.500000e-01 : f32
    %25 = vector.broadcast %cst_13 : f32 to vector<128x128xf32>
    %26 = arith.mulf %25, %22 : vector<128x128xf32>
    %27 = arith.select %24, %22, %26 : vector<128x128xi1>, vector<128x128xf32>
    %c1_i32 = arith.constant 1 : i32
    %28 = arith.index_cast %c1_i32 : i32 to index
    %c0_14 = arith.constant 0 : index
    %c0_15 = arith.constant 0 : index
    %29 = vector.load %arg4[%28, %c0_14, %c0_15] : memref<2x128x128xf32, #tpu.memory_space<vmem>>, vector<1x128x128xf32>
    %30 = vector.shape_cast %29 : vector<1x128x128xf32> to vector<128x128xf32>
    %31 = arith.index_cast %c1_i32 : i32 to index
    %c0_16 = arith.constant 0 : index
    %c0_17 = arith.constant 0 : index
    %32 = vector.load %arg5[%31, %c0_16, %c0_17] : memref<2x1x128xf32, #tpu.memory_space<vmem>>, vector<1x1x128xf32>
    %33 = vector.shape_cast %32 : vector<1x1x128xf32> to vector<1x128xf32>
    %cst_18 = arith.constant dense<0.000000e+00> : vector<128x128xf32>
    %34 = tpu.matmul %27, %30, %cst_18 {dimension_numbers = #tpu.dot_dimension_numbers<[1], [0], [0], [1], [0, 0, 1, 1], [], []>} : vector<128x128xf32>, vector<128x128xf32>, vector<128x128xf32> -> vector<128x128xf32>
    %35 = vector.broadcast %33 : vector<1x128xf32> to vector<128x128xf32>
    %36 = arith.addf %34, %35 : vector<128x128xf32>
    %cst_19 = arith.constant 0.000000e+00 : f32
    %37 = vector.broadcast %cst_19 : f32 to vector<128x128xf32>
    %38 = arith.cmpf oge, %36, %37 : vector<128x128xf32>
    %cst_20 = arith.constant 1.500000e-01 : f32
    %39 = vector.broadcast %cst_20 : f32 to vector<128x128xf32>
    %40 = arith.mulf %39, %36 : vector<128x128xf32>
    %41 = arith.select %38, %36, %40 : vector<128x128xi1>, vector<128x128xf32>
    %c2_i32 = arith.constant 2 : i32
    %c0_21 = arith.constant 0 : index
    %c0_22 = arith.constant 0 : index
    %42 = vector.load %arg6[%c0_21, %c0_22] : memref<128x4xf32, #tpu.memory_space<vmem>>, vector<128x4xf32>
    %cst_23 = arith.constant dense<0.000000e+00> : vector<128x4xf32>
    %43 = tpu.matmul %41, %42, %cst_23 {dimension_numbers = #tpu.dot_dimension_numbers<[1], [0], [0], [1], [0, 0, 1, 1], [], []>} : vector<128x128xf32>, vector<128x4xf32>, vector<128x4xf32> -> vector<128x4xf32>
    %c0_24 = arith.constant 0 : index
    %c0_25 = arith.constant 0 : index
    %44 = vector.load %arg7[%c0_24, %c0_25] : memref<1x4xf32, #tpu.memory_space<vmem>>, vector<1x4xf32>
    %45 = vector.broadcast %44 : vector<1x4xf32> to vector<128x4xf32>
    %46 = arith.addf %43, %45 : vector<128x4xf32>
    %47 = arith.index_cast %1 : i32 to index
    %c0_26 = arith.constant 0 : index
    %48 = vector.load %arg8[%47, %c0_26] : memref<256x4xf32, #tpu.memory_space<vmem>>, vector<128x4xf32>
    tpu.vector_store %arg8[%47, %c0_26], %46 {strides = array<i32>} : memref<256x4xf32, #tpu.memory_space<vmem>>, vector<128x4xf32>,
    %c1_i32_27 = arith.constant 1 : i32
    %c128_i32_28 = arith.constant 128 : i32
    %49 = arith.muli %c1_i32_27, %c128_i32_28 : i32
    %50 = tpu.assume_multiple %49, 128 : i32
    %51 = arith.index_cast %50 : i32 to index
    %c0_29 = arith.constant 0 : index
    %52 = vector.load %arg1[%51, %c0_29] : memref<256x8xf32, #tpu.memory_space<vmem>>, vector<128x8xf32>
    %c0_30 = arith.constant 0 : index
    %c0_31 = arith.constant 0 : index
    %53 = vector.load %arg2[%c0_30, %c0_31] : memref<8x128xf32, #tpu.memory_space<vmem>>, vector<8x128xf32>
    %cst_32 = arith.constant dense<0.000000e+00> : vector<128x128xf32>
    %54 = tpu.matmul %52, %53, %cst_32 {dimension_numbers = #tpu.dot_dimension_numbers<[1], [0], [0], [1], [0, 0, 1, 1], [], []>} : vector<128x8xf32>, vector<8x128xf32>, vector<128x128xf32> -> vector<128x128xf32>
    %c0_33 = arith.constant 0 : index
    %c0_34 = arith.constant 0 : index
    %55 = vector.load %arg3[%c0_33, %c0_34] : memref<1x128xf32, #tpu.memory_space<vmem>>, vector<1x128xf32>
    %56 = vector.broadcast %55 : vector<1x128xf32> to vector<128x128xf32>
    %57 = arith.addf %54, %56 : vector<128x128xf32>
    %cst_35 = arith.constant 0.000000e+00 : f32
    %58 = vector.broadcast %cst_35 : f32 to vector<128x128xf32>
    %59 = arith.cmpf oge, %57, %58 : vector<128x128xf32>
    %cst_36 = arith.constant 1.500000e-01 : f32
    %60 = vector.broadcast %cst_36 : f32 to vector<128x128xf32>
    %61 = arith.mulf %60, %57 : vector<128x128xf32>
    %62 = arith.select %59, %57, %61 : vector<128x128xi1>, vector<128x128xf32>
    %c0_i32_37 = arith.constant 0 : i32
    %63 = arith.index_cast %c0_i32_37 : i32 to index
    %c0_38 = arith.constant 0 : index
    %c0_39 = arith.constant 0 : index
    %64 = vector.load %arg4[%63, %c0_38, %c0_39] : memref<2x128x128xf32, #tpu.memory_space<vmem>>, vector<1x128x128xf32>
    %65 = vector.shape_cast %64 : vector<1x128x128xf32> to vector<128x128xf32>
    %66 = arith.index_cast %c0_i32_37 : i32 to index
    %c0_40 = arith.constant 0 : index
    %c0_41 = arith.constant 0 : index
    %67 = vector.load %arg5[%66, %c0_40, %c0_41] : memref<2x1x128xf32, #tpu.memory_space<vmem>>, vector<1x1x128xf32>
    %68 = vector.shape_cast %67 : vector<1x1x128xf32> to vector<1x128xf32>
    %cst_42 = arith.constant dense<0.000000e+00> : vector<128x128xf32>
    %69 = tpu.matmul %62, %65, %cst_42 {dimension_numbers = #tpu.dot_dimension_numbers<[1], [0], [0], [1], [0, 0, 1, 1], [], []>} : vector<128x128xf32>, vector<128x128xf32>, vector<128x128xf32> -> vector<128x128xf32>
    %70 = vector.broadcast %68 : vector<1x128xf32> to vector<128x128xf32>
    %71 = arith.addf %69, %70 : vector<128x128xf32>
    %cst_43 = arith.constant 0.000000e+00 : f32
    %72 = vector.broadcast %cst_43 : f32 to vector<128x128xf32>
    %73 = arith.cmpf oge, %71, %72 : vector<128x128xf32>
    %cst_44 = arith.constant 1.500000e-01 : f32
    %74 = vector.broadcast %cst_44 : f32 to vector<128x128xf32>
    %75 = arith.mulf %74, %71 : vector<128x128xf32>
    %76 = arith.select %73, %71, %75 : vector<128x128xi1>, vector<128x128xf32>
    %c1_i32_45 = arith.constant 1 : i32
    %77 = arith.index_cast %c1_i32_45 : i32 to index
    %c0_46 = arith.constant 0 : index
    %c0_47 = arith.constant 0 : index
    %78 = vector.load %arg4[%77, %c0_46, %c0_47] : memref<2x128x128xf32, #tpu.memory_space<vmem>>, vector<1x128x128xf32>
    %79 = vector.shape_cast %78 : vector<1x128x128xf32> to vector<128x128xf32>
    %80 = arith.index_cast %c1_i32_45 : i32 to index
    %c0_48 = arith.constant 0 : index
    %c0_49 = arith.constant 0 : index
    %81 = vector.load %arg5[%80, %c0_48, %c0_49] : memref<2x1x128xf32, #tpu.memory_space<vmem>>, vector<1x1x128xf32>
    %82 = vector.shape_cast %81 : vector<1x1x128xf32> to vector<1x128xf32>
    %cst_50 = arith.constant dense<0.000000e+00> : vector<128x128xf32>
    %83 = tpu.matmul %76, %79, %cst_50 {dimension_numbers = #tpu.dot_dimension_numbers<[1], [0], [0], [1], [0, 0, 1, 1], [], []>} : vector<128x128xf32>, vector<128x128xf32>, vector<128x128xf32> -> vector<128x128xf32>
    %84 = vector.broadcast %82 : vector<1x128xf32> to vector<128x128xf32>
    %85 = arith.addf %83, %84 : vector<128x128xf32>
    %cst_51 = arith.constant 0.000000e+00 : f32
    %86 = vector.broadcast %cst_51 : f32 to vector<128x128xf32>
    %87 = arith.cmpf oge, %85, %86 : vector<128x128xf32>
    %cst_52 = arith.constant 1.500000e-01 : f32
    %88 = vector.broadcast %cst_52 : f32 to vector<128x128xf32>
    %89 = arith.mulf %88, %85 : vector<128x128xf32>
    %90 = arith.select %87, %85, %89 : vector<128x128xi1>, vector<128x128xf32>
    %c2_i32_53 = arith.constant 2 : i32
    %c0_54 = arith.constant 0 : index
    %c0_55 = arith.constant 0 : index
    %91 = vector.load %arg6[%c0_54, %c0_55] : memref<128x4xf32, #tpu.memory_space<vmem>>, vector<128x4xf32>
    %cst_56 = arith.constant dense<0.000000e+00> : vector<128x4xf32>
    %92 = tpu.matmul %90, %91, %cst_56 {dimension_numbers = #tpu.dot_dimension_numbers<[1], [0], [0], [1], [0, 0, 1, 1], [], []>} : vector<128x128xf32>, vector<128x4xf32>, vector<128x4xf32> -> vector<128x4xf32>
    %c0_57 = arith.constant 0 : index
    %c0_58 = arith.constant 0 : index
    %93 = vector.load %arg7[%c0_57, %c0_58] : memref<1x4xf32, #tpu.memory_space<vmem>>, vector<1x4xf32>
    %94 = vector.broadcast %93 : vector<1x4xf32> to vector<128x4xf32>
    %95 = arith.addf %92, %94 : vector<128x4xf32>
    %96 = arith.index_cast %50 : i32 to index
    %c0_59 = arith.constant 0 : index
    %97 = vector.load %arg8[%96, %c0_59] : memref<256x4xf32, #tpu.memory_space<vmem>>, vector<128x4xf32>
    tpu.vector_store %arg8[%96, %c0_59], %95 {strides = array<i32>} : memref<256x4xf32, #tpu.memory_space<vmem>>, vector<128x4xf32>,
    %c2_i32_60 = arith.constant 2 : i32
    return
  }
  func.func @transform_0(%arg0: i32) -> (i32, i32) {
    %c0_i32 = arith.constant 0 : i32
    %c0_i32_0 = arith.constant 0 : i32
    return %arg0, %c0_i32 : i32, i32
  }
  func.func @transform_1(%arg0: i32) -> (i32, i32) {
    %c0_i32 = arith.constant 0 : i32
    %c0_i32_0 = arith.constant 0 : i32
    %c0_i32_1 = arith.constant 0 : i32
    return %c0_i32, %c0_i32_0 : i32, i32
  }
  func.func @transform_2(%arg0: i32) -> (i32, i32) {
    %c0_i32 = arith.constant 0 : i32
    %c0_i32_0 = arith.constant 0 : i32
    %c0_i32_1 = arith.constant 0 : i32
    return %c0_i32, %c0_i32_0 : i32, i32
  }
  func.func @transform_3(%arg0: i32) -> (i32, i32, i32) {
    %c0_i32 = arith.constant 0 : i32
    %c0_i32_0 = arith.constant 0 : i32
    %c0_i32_1 = arith.constant 0 : i32
    %c0_i32_2 = arith.constant 0 : i32
    return %c0_i32, %c0_i32_0, %c0_i32_1 : i32, i32, i32
  }
  func.func @transform_4(%arg0: i32) -> (i32, i32, i32) {
    %c0_i32 = arith.constant 0 : i32
    %c0_i32_0 = arith.constant 0 : i32
    %c0_i32_1 = arith.constant 0 : i32
    %c0_i32_2 = arith.constant 0 : i32
    return %c0_i32, %c0_i32_0, %c0_i32_1 : i32, i32, i32
  }
  func.func @transform_5(%arg0: i32) -> (i32, i32) {
    %c0_i32 = arith.constant 0 : i32
    %c0_i32_0 = arith.constant 0 : i32
    %c0_i32_1 = arith.constant 0 : i32
    return %c0_i32, %c0_i32_0 : i32, i32
  }
  func.func @transform_6(%arg0: i32) -> (i32, i32) {
    %c0_i32 = arith.constant 0 : i32
    %c0_i32_0 = arith.constant 0 : i32
    %c0_i32_1 = arith.constant 0 : i32
    return %c0_i32, %c0_i32_0 : i32, i32
  }
  func.func @transform_7(%arg0: i32) -> (i32, i32) {
    %c0_i32 = arith.constant 0 : i32
    %c0_i32_0 = arith.constant 0 : i32
    return %arg0, %c0_i32 : i32, i32
  }
}

</mosaic_0001>

<bundles_post_ra>
// kernel: tpu_custom_call.1
= control target key start
LH: loop header
LB: loop body
LE: loop exit
PB: predicated region body
PF: predicated region fallthrough
CT: control target
= control target key end

     0   :  { %s3102_s24 = smov 0   ;;  %s3720_s0 = inlined_call_operand.vmem [shape: f32[512,8], index: 0, kind: input, shape index: {}]   ;;  %s3721_s1 = inlined_call_operand.vmem [shape: f32[8,128], index: 1, kind: input, shape index: {}]   ;;  %s3722_s2 = inlined_call_operand.vmem [shape: f32[1,128], index: 2, kind: input, shape index: {}]   ;;  %s3723_s3 = inlined_call_operand.vmem [shape: f32[2,128,128], index: 3, kind: input, shape index: {}]   ;;  %s3724_s4 = inlined_call_operand.vmem [shape: f32[2,1,128], index: 4, kind: input, shape index: {}]   ;;  %s3725_s5 = inlined_call_operand.vmem [shape: f32[128,4], index: 5, kind: input, shape index: {}]   ;;  %s3726_s6 = inlined_call_operand.vmem [shape: f32[1,4], index: 6, kind: input, shape index: {}]   ;;  %s3727_s7 = inlined_call_operand.vmem [shape: f32[512,4], index: 7, kind: output, shape index: {}]  }
   0x1 LB: > { %s2106_s25 = sadd.s32 4294967295, %s3060_s24   ;;  %p2110_p0 = scmp.ge.s32.totalorder %s3060_s24, 1  ;;  %s3060_s24 = sphi %s3102_s24, %s17_s24  }
   0x2   : > { %p238_p1 = scmp.lt.s32.totalorder %s3060_s24, 3 }
   0x4   : > { %p239_p2 = pnand %p2110_p0, %p238_p1 }
   0x5   : > { %v3113_v0 = vld [vmem:[%s3721_s1] sm:$0xff] (!%p239_p2)  ;;  %s2111_s28 = sshll.u32 (!%p239_p2), %s2106_s25, 5  ;;  %v549_v2 = vld [vmem:[%s3723_s3 + $0x8] sm:$0xff] (!%p239_p2)  ;;  %v550_v4 = vld [vmem:[%s3723_s3 + $0x10] sm:$0xff] (!%p239_p2)  ;;  %vm306_vm0 = vcmask (!%p239_p2), 64512  }
   0x6   : > { %242 = sbr.rel (%p239_p2) target bundleno = 1389 (0x56d), region = 48  ;;  %v548_v1 = vld [vmem:[%s3723_s3] sm:$0xff] (!%p239_p2)  ;;  %2449 = vmatprep.subr.mxu0 (!%p239_p2), %v3113_v0  ;;  %p271_p3 = scmp.lt.s32.totalorder (!%p239_p2), %s2111_s28, 63  ;;  %v551_v5 = vld [vmem:[%s3723_s3 + $0x18] sm:$0xff] (!%p239_p2)  ;;  %v553_v8 = vld [vmem:[%s3723_s3 + $0x28] sm:$0xff] (!%p239_p2) }
   0x7   : > { %v3122_v3 = vpack.c.bf16 (!%p239_p2), %v549_v2, %v548_v1  ;;  %2450 = vmatpush3.msra.mxu0 (!%p239_p2), %v3113_v0  ;;  %v3131_v6 = vpack.c.bf16 (!%p239_p2), %v551_v5, %v550_v4  ;;  %v552_v7 = vld [vmem:[%s3723_s3 + $0x20] sm:$0xff] (!%p239_p2)  ;;  %v554_v10 = vld [vmem:[%s3723_s3 + $0x30] sm:$0xff] (!%p239_p2)  ;;  %v555_v11 = vld [vmem:[%s3723_s3 + $0x38] sm:$0xff] (!%p239_p2) }
   0x8   : > { %v3145_v9 = vpack.c.bf16 (!%p239_p2), %v553_v8, %v552_v7  ;;  %v3167_v15 = vpack.c.bf16 (!%p239_p2), %v555_v11, %v554_v10  ;;  %v556_v17 = vld [vmem:[%s3723_s3 + $0x40] sm:$0xff] (!%p239_p2)  ;;  %v557_v18 = vld [vmem:[%s3723_s3 + $0x48] sm:$0xff] (!%p239_p2)  ;;  %v558_v22 = vld [vmem:[%s3723_s3 + $0x50] sm:$0xff] (!%p239_p2) }
   0x9   : > { %2838 = vmatprep.subr.bf16.mxu1 (!%p239_p2), %v3122_v3  ;;  %v3181_v20 = vpack.c.bf16 (!%p239_p2), %v557_v18, %v556_v17  ;;  %v559_v23 = vld [vmem:[%s3723_s3 + $0x58] sm:$0xff] (!%p239_p2)  ;;  %v560_v35 = vld [vmem:[%s3723_s3 + $0x60] sm:$0xff] (!%p239_p2)  ;;  %v561_v36 = vld [vmem:[%s3723_s3 + $0x68] sm:$0xff] (!%p239_p2) }
   0xa   : > { %2840 = vmatpush3.bf16.msra.mxu1 (!%p239_p2), %v3122_v3  ;;  %v3195_v25 = vpack.c.bf16 (!%p239_p2), %v559_v23, %v558_v22  ;;  %v3225_v37 = vpack.c.bf16 (!%p239_p2), %v561_v36, %v560_v35  ;;  %v562_v38 = vld [vmem:[%s3723_s3 + $0x70] sm:$0xff] (!%p239_p2)  ;;  %v563_v39 = vld [vmem:[%s3723_s3 + $0x78] sm:$0xff] (!%p239_p2)  ;;  %v2133_v41 = vld [vmem:[%s3723_s3 + $0x80] sm:$0xff] (!%p239_p2) }
   0xb   : > { %2842 = vmatprep.subr.bf16.mxu1 (!%p239_p2), %v3131_v6  ;;  %v3235_v40 = vpack.c.bf16 (!%p239_p2), %v563_v39, %v562_v38  ;;  %v2134_v42 = vld [vmem:[%s3723_s3 + $0x88] sm:$0xff] (!%p239_p2)  ;;  %v2135_v43 = vld [vmem:[%s3723_s3 + $0x90] sm:$0xff] (!%p239_p2)  ;;  %v2136_v45 = vld [vmem:[%s3723_s3 + $0x98] sm:$0xff] (!%p239_p2) }
   0xc   : > { %v3248_v44 = vpack.c.bf16 (!%p239_p2), %v2134_v42, %v2133_v41  ;;  %v3253_v46 = vpack.c.bf16 (!%p239_p2), %v2136_v45, %v2135_v43  ;;  %v2137_v47 = vld [vmem:[%s3723_s3 + $0xa0] sm:$0xff] (!%p239_p2)  ;;  %v2138_v48 = vld [vmem:[%s3723_s3 + $0xa8] sm:$0xff] (!%p239_p2)  ;;  %v2139_v50 = vld [vmem:[%s3723_s3 + $0xb0] sm:$0xff] (!%p239_p2) }
   0xd   : > { %s3729_s28 = smov (!%p271_p3, %s2111_s28), 63  ;;  %v3264_v49 = vpack.c.bf16 %v2138_v48, %v2137_v47  ;;  %v2140_v51 = vld [vmem:[%s3723_s3 + $0xb8] sm:$0xff]  ;;  %v2141_v53 = vld [vmem:[%s3723_s3 + $0xc0] sm:$0xff]  ;;  %v2142_v54 = vld [vmem:[%s3723_s3 + $0xc8] sm:$0xff] }
   0xe   : > { %s2112_s18 = sshll.u32 %s3729_s28, 3  ;;  %2844 = vmatpush3.bf16.msra.mxu1 %v3131_v6  ;;  %2870 = vmatprep.subr.bf16.mxu0 %v3248_v44  ;;  %v3274_v52 = vpack.c.bf16 %v2140_v51, %v2139_v50  ;;  %v3284_v55 = vpack.c.bf16 %v2142_v54, %v2141_v53  ;;  %v2143_v56 = vld [vmem:[%s3723_s3 + $0xd0] sm:$0xff]  ;;  %v2144_v57 = vld [vmem:[%s3723_s3 + $0xd8] sm:$0xff]  ;;  %v2145_v59 = vld [vmem:[%s3723_s3 + $0xe0] sm:$0xff] }
   0xf   : > { %s3152_s21 = scalar_lea.vmem %s3720_s0, %s2112_s18  ;;  %2846 = vmatprep.subr.bf16.mxu1 %v3145_v9  ;;  %v3294_v58 = vpack.c.bf16 %v2144_v57, %v2143_v56  ;;  %v2146_v60 = vld [vmem:[%s3723_s3 + $0xe8] sm:$0xff]  ;;  %v3312_v62 = vld [vmem:[%s3722_s2] ss:$0 sm:$0xff]  ;;  %s3571_s19 = scalar_lea.vmem %s3727_s7, %s2112_s18 }
  0x10   : > { %v282_v12 = vld [vmem:[%s3152_s21] sm:$0xff]  ;;  %v283_v13 = vld [vmem:[%s3152_s21 + $0x8] sm:$0xff]  ;;  %v284_v14 = vld [vmem:[%s3152_s21 + $0x10] sm:$0xff]  ;;  %v3304_v61 = vpack.c.bf16 %v2146_v60, %v2145_v59 }
  0x11   : > { %2451 = vmatprep.mubr.msk.f32.mxu0 %vm306_vm0, %v282_v12  ;;  %v285_v16 = vld [vmem:[%s3152_s21 + $0x18] sm:$0xff]  ;;  %v286_v19 = vld [vmem:[%s3152_s21 + $0x20] sm:$0xff]  ;;  %v287_v21 = vld [vmem:[%s3152_s21 + $0x28] sm:$0xff] }
  0x12   : > { %2452 = vmatmul.mubr.msk.f32.vlgmr.msra.gmra.mrb[0].mxu0 %vm306_vm0, %v283_v13  ;;  %2848 = vmatpush3.bf16.msra.mxu1 %v3145_v9  ;;  %v288_v24 = vld [vmem:[%s3152_s21 + $0x30] sm:$0xff]  ;;  %v289_v26 = vld [vmem:[%s3152_s21 + $0x38] sm:$0xff]  ;;  %v290_v27 = vld [vmem:[%s3152_s21 + $0x40] sm:$0xff] }
  0x13   : > { %2454 = vmatprep.mubr.msk.f32.mxu0 %vm306_vm0, %v284_v14  ;;  %2850 = vmatprep.subr.bf16.mxu1 %v3167_v15  ;;  %v291_v28 = vld [vmem:[%s3152_s21 + $0x48] sm:$0xff]  ;;  %v292_v29 = vld [vmem:[%s3152_s21 + $0x50] sm:$0xff]  ;;  %v293_v30 = vld [vmem:[%s3152_s21 + $0x58] sm:$0xff] }
  0x14   : > { %v294_v31 = vld [vmem:[%s3152_s21 + $0x60] sm:$0xff]  ;;  %v295_v32 = vld [vmem:[%s3152_s21 + $0x68] sm:$0xff]  ;;  %v296_v33 = vld [vmem:[%s3152_s21 + $0x70] sm:$0xff]  ;;  %2872 = vmatpush3.bf16.msra.mxu0 %v3248_v44 }
  0x15   : > { %v297_v34 = vld [vmem:[%s3152_s21 + $0x78] sm:$0xff]  ;;  %2874 = vmatprep.subr.bf16.mxu0 %v3253_v46 }
  0x16   : > { %2455 = vmatmul.mubr.msk.f32.gmra.mrb[2].mxu0 %vm306_vm0, %v285_v16  ;;  %2852 = vmatpush3.bf16.msra.mxu1 %v3167_v15 }
  0x17   : > { %2457 = vmatprep.mubr.msk.f32.mxu0 %vm306_vm0, %v286_v19  ;;  %2854 = vmatprep.subr.bf16.mxu1 %v3181_v20 }
  0x18   : > { %2876 = vmatpush3.bf16.msra.mxu0 %v3253_v46 }
  0x19   : > { %2878 = vmatprep.subr.bf16.mxu0 %v3264_v49 }
  0x1a   : > { %2458 = vmatmul.mubr.msk.f32.gmra.mrb[4].mxu0 %vm306_vm0, %v287_v21  ;;  %2856 = vmatpush3.bf16.msra.mxu1 %v3181_v20 }
  0x1b   : > { %2460 = vmatprep.mubr.msk.f32.mxu0 %vm306_vm0, %v288_v24  ;;  %2858 = vmatprep.subr.bf16.mxu1 %v3195_v25 }
  0x1c   : > { %2880 = vmatpush3.bf16.msra.mxu0 %v3264_v49 }
  0x1d   : > { %2882 = vmatprep.subr.bf16.mxu0 %v3274_v52 }
  0x1e   : > { %2461 = vmatmul.mubr.msk.f32.gmra.mrb[6].mxu0 %vm306_vm0, %v289_v26  ;;  %2860 = vmatpush3.bf16.msra.mxu1 %v3195_v25 }
  0x1f   : > { %2463 = vmatprep.mubr.msk.f32.mxu0 %vm306_vm0, %v290_v27  ;;  %2862 = vmatprep.subr.bf16.mxu1 %v3225_v37 }
  0x20   : > { %2884 = vmatpush3.bf16.msra.mxu0 %v3274_v52 }
  0x21   : > { %2886 = vmatprep.subr.bf16.mxu0 %v3284_v55 }
  0x22   : > { %2464 = vmatmul.mubr.msk.f32.gmra.mrb[8].mxu0 %vm306_vm0, %v291_v28  ;;  %2864 = vmatpush3.bf16.msra.mxu1 %v3225_v37 }
  0x23   : > { %2466 = vmatprep.mubr.msk.f32.mxu0 %vm306_vm0, %v292_v29  ;;  %2866 = vmatprep.subr.bf16.mxu1 %v3235_v40 }
  0x24   : > { %2888 = vmatpush3.bf16.msra.mxu0 %v3284_v55 }
  0x25   : > { %2890 = vmatprep.subr.bf16.mxu0 %v3294_v58 }
  0x26   : > { %2467 = vmatmul.mubr.msk.f32.gmra.mrb[10].mxu0 %vm306_vm0, %v293_v30  ;;  %2868 = vmatpush3.bf16.msra.mxu1 %v3235_v40 }
  0x27   : > { %2469 = vmatprep.mubr.msk.f32.mxu0 %vm306_vm0, %v294_v31 }
  0x28   : > { %2892 = vmatpush3.bf16.msra.mxu0 %v3294_v58 }
  0x29   : > { %2894 = vmatprep.subr.bf16.mxu0 %v3304_v61 }
  0x2a   : > { %2470 = vmatmul.mubr.msk.f32.gmra.mrb[12].mxu0 %vm306_vm0, %v295_v32 }
  0x2b   : > { %2472 = vmatprep.mubr.msk.f32.mxu0 %vm306_vm0, %v296_v33 }
  0x2c   : > { %2896 = vmatpush3.bf16.msra.mxu0 %v3304_v61 }
  0x2e   : > { %2473 = vmatmul.mubr.msk.f32.gmra.mrb[14].mxu0 %vm306_vm0, %v297_v34 }
  0xe5   : > { %v2453_v63 = vpop.f32.mrb[0].mxu0 }
  0xe6   : > { %v427_v1 = vadd.f32 %v2453_v63, %v3312_v62  ;;  %v421_v2 = vpop.f32.mrb[1].mxu0 }
  0xe7   : > { %v422_v4 = vadd.f32 %v3312_v62, %v421_v2 }
  0xe8   : > { %v517_v5 = vmul.f32 0.15, %v427_v1  ;;  %vm501_vm2 = vcmp.ge.f32.partialorder %v427_v1, 0.0 }
  0xe9   : > { %v2456_v7 = vpop.f32.mrb[2].mxu0  ;;  %vm500_vm1 = vcmp.ge.f32.partialorder %v422_v4, 0.0  ;;  %v516_v8 = vmul.f32 0.15, %v422_v4 }
  0xea   : > { %v437_v10 = vadd.f32 %v2456_v7, %v3312_v62  ;;  %v431_v11 = vpop.f32.mrb[3].mxu0  ;;  %v533_v16 = vsel %vm501_vm2, %v427_v1, %v517_v5 }
  0xeb   : > { %v432_v12 = vadd.f32 %v3312_v62, %v431_v11  ;;  %v532_v13 = vsel %vm500_vm1, %v422_v4, %v516_v8 }
  0xec   : > { %v519_v14 = vmul.f32 0.15, %v437_v10  ;;  %2507 = vmatprep.mubr.f32.mxu1 %v532_v13  ;;  %vm503_vm4 = vcmp.ge.f32.partialorder %v437_v10, 0.0 }
  0xed   : > { %v518_v17 = vmul.f32 0.15, %v432_v12  ;;  %v2459_v18 = vpop.f32.mrb[4].mxu0  ;;  %2508 = vmatmul.mubr.f32.vlgmr.msra.gmra.mrb[0].mxu1 %v533_v16  ;;  %vm502_vm3 = vcmp.ge.f32.partialorder %v432_v12, 0.0 }
  0xee   : > { %v447_v19 = vadd.f32 %v2459_v18, %v3312_v62  ;;  %v441_v21 = vpop.f32.mrb[5].mxu0  ;;  %v535_v26 = vsel %vm503_vm4, %v437_v10, %v519_v14 }
  0xef   : > { %v442_v22 = vadd.f32 %v3312_v62, %v441_v21  ;;  %v534_v23 = vsel %vm502_vm3, %v432_v12, %v518_v17 }
  0xf0   : > { %v521_v24 = vmul.f32 0.15, %v447_v19  ;;  %2510 = vmatprep.mubr.f32.mxu1 %v534_v23  ;;  %vm505_vm6 = vcmp.ge.f32.partialorder %v447_v19, 0.0  ;;  %v2148_v23 = vld [vmem:[%s3723_s3 + $0xf8] sm:$0xff] }
  0xf1   : > { %v520_v27 = vmul.f32 0.15, %v442_v22  ;;  %v2462_v28 = vpop.f32.mrb[6].mxu0  ;;  %2511 = vmatmul.mubr.f32.gmra.mrb[2].mxu1 %v535_v26  ;;  %vm504_vm5 = vcmp.ge.f32.partialorder %v442_v22, 0.0  ;;  %v982_v26 = vld [vmem:[%s3725_s5] sm:$0xff] }
  0xf2   : > { %v457_v29 = vadd.f32 %v2462_v28, %v3312_v62  ;;  %v451_v30 = vpop.f32.mrb[7].mxu0  ;;  %v537_v34 = vsel %vm505_vm6, %v447_v19, %v521_v24  ;;  %v984_v28 = vld [vmem:[%s3725_s5 + $0x10] sm:$0xff] }
  0xf3   : > { %v452_v31 = vadd.f32 %v3312_v62, %v451_v30  ;;  %v536_v32 = vsel %vm504_vm5, %v442_v22, %v520_v27  ;;  %v2147_v22 = vld [vmem:[%s3723_s3 + $0xf0] sm:$0xff]  ;;  %v983_v27 = vld [vmem:[%s3725_s5 + $0x8] sm:$0xff]  ;;  %v985_v30 = vld [vmem:[%s3725_s5 + $0x18] sm:$0xff] }
  0xf4   : > { %v523_v33 = vmul.f32 0.15, %v457_v29  ;;  %2513 = vmatprep.mubr.f32.mxu1 %v536_v32  ;;  %vm507_vm8 = vcmp.ge.f32.partialorder %v457_v29, 0.0  ;;  %v3336_v24 = vpack.c.bf16 %v2148_v23, %v2147_v22  ;;  %v986_v32 = vld [vmem:[%s3725_s5 + $0x20] sm:$0xff] }
  0xf5   : > { %v522_v35 = vmul.f32 0.15, %v452_v31  ;;  %v2465_v36 = vpop.f32.mrb[8].mxu0  ;;  %2514 = vmatmul.mubr.f32.gmra.mrb[4].mxu1 %v537_v34  ;;  %vm506_vm7 = vcmp.ge.f32.partialorder %v452_v31, 0.0 }
  0xf6   : > { %v467_v38 = vadd.f32 %v2465_v36, %v3312_v62  ;;  %v461_v39 = vpop.f32.mrb[9].mxu0  ;;  %v539_v45 = vsel %vm507_vm8, %v457_v29, %v523_v33  ;;  %2898 = vmatprep.subr.bf16.mxu0 %v3336_v24  ;;  %v3350_v29 = vpack.c.bf16 %v983_v27, %v982_v26  ;;  %v987_v33 = vld [vmem:[%s3725_s5 + $0x28] sm:$0xff]  ;;  %v989_v36 = vld [vmem:[%s3725_s5 + $0x38] sm:$0xff] }
  0xf7   : > { %v462_v41 = vadd.f32 %v3312_v62, %v461_v39  ;;  %v538_v42 = vsel %vm506_vm7, %v452_v31, %v522_v35  ;;  %2900 = vmatpush3.bf16.msra.mxu0 %v3336_v24  ;;  %v3355_v31 = vpack.c.bf16 %v985_v30, %v984_v28  ;;  %v3366_v34 = vpack.c.bf16 %v987_v33, %v986_v32  ;;  %v988_v35 = vld [vmem:[%s3725_s5 + $0x30] sm:$0xff]  ;;  %v990_v39 = vld [vmem:[%s3725_s5 + $0x40] sm:$0xff] }
  0xf8   : > { %v525_v43 = vmul.f32 0.15, %v467_v38  ;;  %2516 = vmatprep.mubr.f32.mxu1 %v538_v42  ;;  %vm509_vm10 = vcmp.ge.f32.partialorder %v467_v38, 0.0  ;;  %2643 = vmatprep.subr.mxu0 %v3113_v0 }
  0xf9   : > { %v524_v47 = vmul.f32 0.15, %v462_v41  ;;  %v2468_v48 = vpop.f32.mrb[10].mxu0  ;;  %2517 = vmatmul.mubr.f32.gmra.mrb[6].mxu1 %v539_v45  ;;  %vm508_vm9 = vcmp.ge.f32.partialorder %v462_v41, 0.0  ;;  %2902 = vmatprep.subr.bf16.mxu1 %v3350_v29  ;;  %v993_v45 = vld [vmem:[%s3725_s5 + $0x58] sm:$0xff] }
  0xfa   : > { %v477_v50 = vadd.f32 %v2468_v48, %v3312_v62  ;;  %v471_v51 = vpop.f32.mrb[11].mxu0  ;;  %v541_v57 = vsel %vm509_vm10, %v467_v38, %v525_v43  ;;  %2904 = vmatpush3.bf16.msra.mxu1 %v3350_v29  ;;  %v3376_v38 = vpack.c.bf16 %v989_v36, %v988_v35  ;;  %v992_v43 = vld [vmem:[%s3725_s5 + $0x50] sm:$0xff]  ;;  %v994_v48 = vld [vmem:[%s3725_s5 + $0x60] sm:$0xff] }
  0xfb   : > { %v472_v53 = vadd.f32 %v3312_v62, %v471_v51  ;;  %v540_v54 = vsel %vm508_vm9, %v462_v41, %v524_v47  ;;  %2906 = vmatprep.subr.bf16.mxu1 %v3355_v31  ;;  %v991_v41 = vld [vmem:[%s3725_s5 + $0x48] sm:$0xff]  ;;  %v3396_v47 = vpack.c.bf16 %v993_v45, %v992_v43 }
  0xfc   : > { %v527_v56 = vmul.f32 0.15, %v477_v50  ;;  %2519 = vmatprep.mubr.f32.mxu1 %v540_v54  ;;  %vm511_vm12 = vcmp.ge.f32.partialorder %v477_v50, 0.0  ;;  %v3386_v42 = vpack.c.bf16 %v991_v41, %v990_v39 }
  0xfd   : > { %v526_v59 = vmul.f32 0.15, %v472_v53  ;;  %v2471_v60 = vpop.f32.mrb[12].mxu0  ;;  %2520 = vmatmul.mubr.f32.gmra.mrb[8].mxu1 %v541_v57  ;;  %vm510_vm11 = vcmp.ge.f32.partialorder %v472_v53, 0.0 }
  0xfe   : > { %v487_v63 = vadd.f32 %v2471_v60, %v3312_v62  ;;  %v481_v1 = vpop.f32.mrb[13].mxu0  ;;  %v543_v7 = vsel %vm511_vm12, %v477_v50, %v527_v56  ;;  %2908 = vmatpush3.bf16.msra.mxu1 %v3355_v31  ;;  %v995_v50 = vld [vmem:[%s3725_s5 + $0x68] sm:$0xff] }
  0xff   : > { %v482_v2 = vadd.f32 %v3312_v62, %v481_v1  ;;  %v542_v4 = vsel %vm510_vm11, %v472_v53, %v526_v59  ;;  %2910 = vmatprep.subr.bf16.mxu1 %v3366_v34  ;;  %v3406_v51 = vpack.c.bf16 %v995_v50, %v994_v48  ;;  %v3414_v53 = vld [vmem:[%s3724_s4] ss:$0 sm:$0xff] }
 0x100   : > { %v529_v5 = vmul.f32 0.15, %v487_v63  ;;  %2522 = vmatprep.mubr.f32.mxu1 %v542_v4  ;;  %vm513_vm14 = vcmp.ge.f32.partialorder %v487_v63, 0.0 }
 0x101   : > { %v528_v8 = vmul.f32 0.15, %v482_v2  ;;  %v2474_v10 = vpop.f32.mrb[14].mxu0  ;;  %2523 = vmatmul.mubr.f32.gmra.mrb[10].mxu1 %v543_v7  ;;  %vm512_vm13 = vcmp.ge.f32.partialorder %v482_v2, 0.0 }
 0x102   : > { %v497_v11 = vadd.f32 %v2474_v10, %v3312_v62  ;;  %v491_v12 = vpop.f32.mrb[15].mxu0  ;;  %v545_v17 = vsel %vm513_vm14, %v487_v63, %v529_v5  ;;  %2912 = vmatpush3.bf16.msra.mxu1 %v3366_v34 }
 0x103   : > { %v492_v13 = vadd.f32 %v3312_v62, %v491_v12  ;;  %v544_v14 = vsel %vm512_vm13, %v482_v2, %v528_v8  ;;  %2914 = vmatprep.subr.bf16.mxu1 %v3376_v38 }
 0x104   : > { %v531_v16 = vmul.f32 0.15, %v497_v11  ;;  %2525 = vmatprep.mubr.f32.mxu1 %v544_v14  ;;  %vm515_vm1 = vcmp.ge.f32.partialorder %v497_v11, 0.0 }
 0x105   : > { %v530_v18 = vmul.f32 0.15, %v492_v13  ;;  %2526 = vmatmul.mubr.f32.gmra.mrb[12].mxu1 %v545_v17  ;;  %vm514_vm15 = vcmp.ge.f32.partialorder %v492_v13, 0.0 }
 0x106   : > { %v547_v21 = vsel %vm515_vm1, %v497_v11, %v531_v16  ;;  %2916 = vmatpush3.bf16.msra.mxu1 %v3376_v38 }
 0x107   : > { %v546_v19 = vsel %vm514_vm15, %v492_v13, %v530_v18  ;;  %2918 = vmatprep.subr.bf16.mxu1 %v3386_v42 }
 0x108   : > { %2528 = vmatprep.mubr.f32.mxu1 %v546_v19 }
 0x109   : > { %2529 = vmatmul.mubr.f32.gmra.mrb[14].mxu1 %v547_v21 }
 0x10a   : > { %2920 = vmatpush3.bf16.msra.mxu1 %v3386_v42 }
 0x10b   : > { %2922 = vmatprep.subr.bf16.mxu1 %v3396_v47 }
 0x10e   : > { %2924 = vmatpush3.bf16.msra.mxu1 %v3396_v47 }
 0x10f   : > { %2926 = vmatprep.subr.bf16.mxu1 %v3406_v51 }
 0x112   : > { %2928 = vmatpush3.bf16.msra.mxu1 %v3406_v51 }
 0x1c0   : > { %v2509_v54 = vpop.f32.mrb[0].mxu1 }
 0x1c1   : > { %v643_v56 = vadd.f32 %v2509_v54, %v3414_v53  ;;  %v637_v57 = vpop.f32.mrb[1].mxu1 }
 0x1c2   : > { %v638_v59 = vadd.f32 %v3414_v53, %v637_v57 }
 0x1c3   : > { %v733_v60 = vmul.f32 0.15, %v643_v56  ;;  %vm717_vm2 = vcmp.ge.f32.partialorder %v643_v56, 0.0 }
 0x1c4   : > { %v732_v63 = vmul.f32 0.15, %v638_v59  ;;  %v2512_v1 = vpop.f32.mrb[2].mxu1  ;;  %vm716_vm3 = vcmp.ge.f32.partialorder %v638_v59, 0.0 }
 0x1c5   : > { %v653_v2 = vadd.f32 %v2512_v1, %v3414_v53  ;;  %v647_v4 = vpop.f32.mrb[3].mxu1  ;;  %v749_v8 = vsel %vm717_vm2, %v643_v56, %v733_v60 }
 0x1c6   : > { %v648_v5 = vadd.f32 %v3414_v53, %v647_v4  ;;  %v748_v7 = vsel %vm716_vm3, %v638_v59, %v732_v63 }
 0x1c7   : > { %v735_v10 = vmul.f32 0.15, %v653_v2  ;;  %2563 = vmatprep.mubr.f32.mxu0 %v748_v7  ;;  %vm719_vm5 = vcmp.ge.f32.partialorder %v653_v2, 0.0 }
 0x1c8   : > { %v734_v11 = vmul.f32 0.15, %v648_v5  ;;  %v2515_v12 = vpop.f32.mrb[4].mxu1  ;;  %2564 = vmatmul.mubr.f32.vlgmr.msra.gmra.mrb[16].mxu0 %v749_v8  ;;  %vm718_vm4 = vcmp.ge.f32.partialorder %v648_v5, 0.0 }
 0x1c9   : > { %v663_v13 = vadd.f32 %v2515_v12, %v3414_v53  ;;  %2644 = vmatpush3.msra.mxu0 %v3113_v0  ;;  %v657_v14 = vpop.f32.mrb[5].mxu1  ;;  %v751_v19 = vsel %vm719_vm5, %v653_v2, %v735_v10 }
 0x1ca   : > { %v658_v16 = vadd.f32 %v3414_v53, %v657_v14  ;;  %v750_v17 = vsel %vm718_vm4, %v648_v5, %v734_v11  ;;  %2966 = vmatprep.subr.bf16.mxu0 %v3248_v44 }
 0x1cb   : > { %v737_v18 = vmul.f32 0.15, %v663_v13  ;;  %2566 = vmatprep.mubr.f32.mxu0 %v750_v17  ;;  %vm721_vm7 = vcmp.ge.f32.partialorder %v663_v13, 0.0 }
 0x1cc   : > { %v736_v21 = vmul.f32 0.15, %v658_v16  ;;  %v2518_v22 = vpop.f32.mrb[6].mxu1  ;;  %2567 = vmatmul.mubr.f32.gmra.mrb[18].mxu0 %v751_v19  ;;  %vm720_vm6 = vcmp.ge.f32.partialorder %v658_v16, 0.0 }
 0x1cd   : > { %v673_v23 = vadd.f32 %v2518_v22, %v3414_v53  ;;  %v667_v26 = vpop.f32.mrb[7].mxu1  ;;  %v753_v30 = vsel %vm721_vm7, %v663_v13, %v737_v18 }
 0x1ce   : > { %v668_v27 = vadd.f32 %v3414_v53, %v667_v26  ;;  %v752_v0 = vsel %vm720_vm6, %v658_v16, %v736_v21  ;;  %v2152_v26 = vld [vmem:[%s3152_s21 + $0x80] sm:$0xff] }
 0x1cf   : > { %v739_v28 = vmul.f32 0.15, %v673_v23  ;;  %2569 = vmatprep.mubr.f32.mxu0 %v752_v0  ;;  %vm723_vm9 = vcmp.ge.f32.partialorder %v673_v23, 0.0  ;;  %v2153_v0 = vld [vmem:[%s3152_s21 + $0x88] sm:$0xff] }
 0x1d0   : > { %v738_v32 = vmul.f32 0.15, %v668_v27  ;;  %v2521_v33 = vpop.f32.mrb[8].mxu1  ;;  %2570 = vmatmul.mubr.f32.gmra.mrb[20].mxu0 %v753_v30  ;;  %vm722_vm8 = vcmp.ge.f32.partialorder %v668_v27, 0.0  ;;  %v2155_v30 = vld [vmem:[%s3152_s21 + $0x98] sm:$0xff] }
 0x1d1   : > { %v683_v35 = vadd.f32 %v2521_v33, %v3414_v53  ;;  %v677_v36 = vpop.f32.mrb[9].mxu1  ;;  %v755_v45 = vsel %vm723_vm9, %v673_v23, %v739_v28  ;;  %v2154_v28 = vld [vmem:[%s3152_s21 + $0x90] sm:$0xff]  ;;  %v2157_v33 = vld [vmem:[%s3152_s21 + $0xa8] sm:$0xff] }
 0x1d2   : > { %v678_v39 = vadd.f32 %v3414_v53, %v677_v36  ;;  %v754_v41 = vsel %vm722_vm8, %v668_v27, %v738_v32  ;;  %v2156_v32 = vld [vmem:[%s3152_s21 + $0xa0] sm:$0xff] }
 0x1d3   : > { %v741_v43 = vmul.f32 0.15, %v683_v35  ;;  %2572 = vmatprep.mubr.f32.mxu0 %v754_v41  ;;  %vm725_vm11 = vcmp.ge.f32.partialorder %v683_v35, 0.0  ;;  %v2160_v36 = vld [vmem:[%s3152_s21 + $0xc0] sm:$0xff] }
 0x1d4   : > { %v740_v48 = vmul.f32 0.15, %v678_v39  ;;  %v2524_v50 = vpop.f32.mrb[10].mxu1  ;;  %2573 = vmatmul.mubr.f32.gmra.mrb[22].mxu0 %v755_v45  ;;  %vm724_vm10 = vcmp.ge.f32.partialorder %v678_v39, 0.0  ;;  %v2164_v41 = vld [vmem:[%s3152_s21 + $0xe0] sm:$0xff]  ;;  %v2167_v45 = vld [vmem:[%s3152_s21 + $0xf8] sm:$0xff] }
 0x1d5   : > { %v693_v54 = vadd.f32 %v2524_v50, %v3414_v53  ;;  %v687_v56 = vpop.f32.mrb[11].mxu1  ;;  %v757_v63 = vsel %vm725_vm11, %v683_v35, %v741_v43  ;;  %v2158_v35 = vld [vmem:[%s3152_s21 + $0xb0] sm:$0xff]  ;;  %v2165_v43 = vld [vmem:[%s3152_s21 + $0xe8] sm:$0xff] }
 0x1d6   : > { %v688_v57 = vadd.f32 %v3414_v53, %v687_v56  ;;  %v756_v59 = vsel %vm724_vm10, %v678_v39, %v740_v48  ;;  %v2162_v39 = vld [vmem:[%s3152_s21 + $0xd0] sm:$0xff] }
 0x1d7   : > { %v743_v60 = vmul.f32 0.15, %v693_v54  ;;  %2575 = vmatprep.mubr.f32.mxu0 %v756_v59  ;;  %vm727_vm13 = vcmp.ge.f32.partialorder %v693_v54, 0.0 }
 0x1d8   : > { %v742_v1 = vmul.f32 0.15, %v688_v57  ;;  %v2527_v2 = vpop.f32.mrb[12].mxu1  ;;  %2576 = vmatmul.mubr.f32.gmra.mrb[24].mxu0 %v757_v63  ;;  %vm726_vm12 = vcmp.ge.f32.partialorder %v688_v57, 0.0 }
 0x1d9   : > { %v703_v4 = vadd.f32 %v2527_v2, %v3414_v53  ;;  %v697_v5 = vpop.f32.mrb[13].mxu1  ;;  %v759_v11 = vsel %vm727_vm13, %v693_v54, %v743_v60 }
 0x1da   : > { %v698_v7 = vadd.f32 %v3414_v53, %v697_v5  ;;  %v758_v8 = vsel %vm726_vm12, %v688_v57, %v742_v1 }
 0x1db   : > { %v745_v10 = vmul.f32 0.15, %v703_v4  ;;  %2578 = vmatprep.mubr.f32.mxu0 %v758_v8  ;;  %vm729_vm15 = vcmp.ge.f32.partialorder %v703_v4, 0.0 }
 0x1dc   : > { %v744_v12 = vmul.f32 0.15, %v698_v7  ;;  %v2530_v13 = vpop.f32.mrb[14].mxu1  ;;  %2579 = vmatmul.mubr.f32.gmra.mrb[26].mxu0 %v759_v11  ;;  %vm728_vm14 = vcmp.ge.f32.partialorder %v698_v7, 0.0 }
 0x1dd   : > { %v713_v14 = vadd.f32 %v2530_v13, %v3414_v53  ;;  %v707_v16 = vpop.f32.mrb[15].mxu1  ;;  %v761_v21 = vsel %vm729_vm15, %v703_v4, %v745_v10 }
 0x1de   : > { %v708_v17 = vadd.f32 %v3414_v53, %v707_v16  ;;  %v760_v18 = vsel %vm728_vm14, %v698_v7, %v744_v12 }
 0x1df   : > { %v747_v19 = vmul.f32 0.15, %v713_v14  ;;  %2581 = vmatprep.mubr.f32.mxu0 %v760_v18  ;;  %vm731_vm2 = vcmp.ge.f32.partialorder %v713_v14, 0.0 }
 0x1e0   : > { %v746_v22 = vmul.f32 0.15, %v708_v17  ;;  %2582 = vmatmul.mubr.f32.gmra.mrb[28].mxu0 %v761_v21  ;;  %vm730_vm1 = vcmp.ge.f32.partialorder %v708_v17, 0.0 }
 0x1e1   : > { %v763_v27 = vsel %vm731_vm2, %v713_v14, %v747_v19 }
 0x1e2   : > { %v762_v23 = vsel %vm730_vm1, %v708_v17, %v746_v22 }
 0x1e3   : > { %2584 = vmatprep.mubr.f32.mxu0 %v762_v23 }
 0x1e4   : > { %2585 = vmatmul.mubr.f32.gmra.mrb[30].mxu0 %v763_v27 }
 0x1e5   : > { %2645 = vmatprep.mubr.msk.f32.mxu0 %vm306_vm0, %v2152_v26 }
 0x1e8   : > { %2646 = vmatmul.mubr.msk.f32.vlgmr.msra.gmra.mrb[32].mxu0 %vm306_vm0, %v2153_v0 }
 0x1e9   : > { %2648 = vmatprep.mubr.msk.f32.mxu0 %vm306_vm0, %v2154_v28  ;;  %2968 = vmatpush3.bf16.msra.mxu0 %v3248_v44  ;;  %v2159_v44 = vld [vmem:[%s3152_s21 + $0xb8] sm:$0xff] }
 0x1ea   : > { %2970 = vmatprep.subr.bf16.mxu0 %v3253_v46 }
 0x1ec   : > { %2649 = vmatmul.mubr.msk.f32.gmra.mrb[34].mxu0 %vm306_vm0, %v2155_v30 }
 0x1ed   : > { %2651 = vmatprep.mubr.msk.f32.mxu0 %vm306_vm0, %v2156_v32  ;;  %2972 = vmatpush3.bf16.msra.mxu0 %v3253_v46  ;;  %v2161_v46 = vld [vmem:[%s3152_s21 + $0xc8] sm:$0xff] }
 0x1ee   : > { %2974 = vmatprep.subr.bf16.mxu0 %v3264_v49 }
 0x1f0   : > { %2652 = vmatmul.mubr.msk.f32.gmra.mrb[36].mxu0 %vm306_vm0, %v2157_v33 }
 0x1f1   : > { %2654 = vmatprep.mubr.msk.f32.mxu0 %vm306_vm0, %v2158_v35  ;;  %2976 = vmatpush3.bf16.msra.mxu0 %v3264_v49  ;;  %v2163_v49 = vld [vmem:[%s3152_s21 + $0xd8] sm:$0xff] }
 0x1f2   : > { %2978 = vmatprep.subr.bf16.mxu0 %v3274_v52 }
 0x1f4   : > { %2655 = vmatmul.mubr.msk.f32.gmra.mrb[38].mxu0 %vm306_vm0, %v2159_v44 }
 0x1f5   : > { %2657 = vmatprep.mubr.msk.f32.mxu0 %vm306_vm0, %v2160_v36  ;;  %2980 = vmatpush3.bf16.msra.mxu0 %v3274_v52  ;;  %v2166_v52 = vld [vmem:[%s3152_s21 + $0xf0] sm:$0xff] }
 0x1f6   : > { %2982 = vmatprep.subr.bf16.mxu0 %v3284_v55 }
 0x1f8   : > { %2658 = vmatmul.mubr.msk.f32.gmra.mrb[40].mxu0 %vm306_vm0, %v2161_v46 }
 0x1f9   : > { %2660 = vmatprep.mubr.msk.f32.mxu0 %vm306_vm0, %v2162_v39  ;;  %2984 = vmatpush3.bf16.msra.mxu0 %v3284_v55  ;;  %v996_v55 = vld [vmem:[%s3725_s5 + $0x70] sm:$0xff] }
 0x1fa   : > { %2986 = vmatprep.subr.bf16.mxu0 %v3294_v58 }
 0x1fc   : > { %2661 = vmatmul.mubr.msk.f32.gmra.mrb[42].mxu0 %vm306_vm0, %v2163_v49 }
 0x1fd   : > { %2663 = vmatprep.mubr.msk.f32.mxu0 %vm306_vm0, %v2164_v41  ;;  %2988 = vmatpush3.bf16.msra.mxu0 %v3294_v58  ;;  %v997_v58 = vld [vmem:[%s3725_s5 + $0x78] sm:$0xff] }
 0x1fe   : > { %2990 = vmatprep.subr.bf16.mxu0 %v3304_v61  ;;  %v3488_v48 = vpack.c.bf16 %v997_v58, %v996_v55 }
 0x200   : > { %2664 = vmatmul.mubr.msk.f32.gmra.mrb[44].mxu0 %vm306_vm0, %v2165_v43  ;;  %2930 = vmatprep.subr.bf16.mxu1 %v3488_v48 }
 0x201   : > { %2666 = vmatprep.mubr.msk.f32.mxu0 %vm306_vm0, %v2166_v52  ;;  %2992 = vmatpush3.bf16.msra.mxu0 %v3304_v61  ;;  %v3496_v61 = vld [vmem:[%s3724_s4 + $0x1] ss:$0 sm:$0xff] }
 0x202   : > { %2994 = vmatprep.subr.bf16.mxu0 %v3336_v24  ;;  %2932 = vmatpush3.bf16.msra.mxu1 %v3488_v48 }
 0x203   : > { %2934 = vmatprep.subr.bf16.mxu1 %v3122_v3 }
 0x204   : > { %2667 = vmatmul.mubr.msk.f32.gmra.mrb[46].mxu0 %vm306_vm0, %v2167_v45 }
 0x205   : > { %2996 = vmatpush3.bf16.msra.mxu0 %v3336_v24 }
 0x206   : > { %2998 = vmatprep.subr.bf16.mxu0 %v3350_v29 }
 0x29b   : > { %v2565_v24 = vpop.f32.mrb[16].mxu0 }
 0x29c   : > { %v861_v50 = vadd.f32 %v2565_v24, %v3496_v61  ;;  %v855_v54 = vpop.f32.mrb[17].mxu0 }
 0x29d   : > { %v856_v56 = vadd.f32 %v3496_v61, %v855_v54 }
 0x29e   : > { %v951_v57 = vmul.f32 0.15, %v861_v50  ;;  %vm935_vm0 = vcmp.ge.f32.partialorder %v861_v50, 0.0 }
 0x29f   : > { %v950_v59 = vmul.f32 0.15, %v856_v56  ;;  %v2568_v60 = vpop.f32.mrb[18].mxu0  ;;  %vm934_vm3 = vcmp.ge.f32.partialorder %v856_v56, 0.0 }
 0x2a0   : > { %v871_v63 = vadd.f32 %v2568_v60, %v3496_v61  ;;  %v865_v1 = vpop.f32.mrb[19].mxu0  ;;  %v967_v5 = vsel %vm935_vm0, %v861_v50, %v951_v57 }
 0x2a1   : > { %v866_v2 = vadd.f32 %v3496_v61, %v865_v1  ;;  %v966_v4 = vsel %vm934_vm3, %v856_v56, %v950_v59 }
 0x2a2   : > { %v953_v7 = vmul.f32 0.15, %v871_v63  ;;  %2619 = vmatprep.mubr.f32.mxu1 %v966_v4  ;;  %vm937_vm5 = vcmp.ge.f32.partialorder %v871_v63, 0.0 }
 0x2a3   : > { %v952_v8 = vmul.f32 0.15, %v866_v2  ;;  %v2571_v10 = vpop.f32.mrb[20].mxu0  ;;  %2620 = vmatmul.mubr.f32.vlgmr.msra.gmra.mrb[16].mxu1 %v967_v5  ;;  %vm936_vm4 = vcmp.ge.f32.partialorder %v866_v2, 0.0 }
 0x2a4   : > { %v881_v11 = vadd.f32 %v2571_v10, %v3496_v61  ;;  %2936 = vmatpush3.bf16.msra.mxu1 %v3122_v3  ;;  %v875_v12 = vpop.f32.mrb[21].mxu0  ;;  %v969_v17 = vsel %vm937_vm5, %v871_v63, %v953_v7 }
 0x2a5   : > { %v876_v13 = vadd.f32 %v3496_v61, %v875_v12  ;;  %v968_v14 = vsel %vm936_vm4, %v866_v2, %v952_v8  ;;  %2938 = vmatprep.subr.bf16.mxu1 %v3131_v6 }
 0x2a6   : > { %v955_v16 = vmul.f32 0.15, %v881_v11  ;;  %2622 = vmatprep.mubr.f32.mxu1 %v968_v14  ;;  %vm939_vm7 = vcmp.ge.f32.partialorder %v881_v11, 0.0 }
 0x2a7   : > { %v954_v18 = vmul.f32 0.15, %v876_v13  ;;  %v2574_v19 = vpop.f32.mrb[22].mxu0  ;;  %2623 = vmatmul.mubr.f32.gmra.mrb[18].mxu1 %v969_v17  ;;  %vm938_vm6 = vcmp.ge.f32.partialorder %v876_v13, 0.0 }
 0x2a8   : > { %v891_v21 = vadd.f32 %v2574_v19, %v3496_v61  ;;  %2940 = vmatpush3.bf16.msra.mxu1 %v3131_v6  ;;  %v885_v22 = vpop.f32.mrb[23].mxu0  ;;  %v971_v27 = vsel %vm939_vm7, %v881_v11, %v955_v16 }
 0x2a9   : > { %v886_v3 = vadd.f32 %v3496_v61, %v885_v22  ;;  %v970_v23 = vsel %vm938_vm6, %v876_v13, %v954_v18  ;;  %2942 = vmatprep.subr.bf16.mxu1 %v3145_v9 }
 0x2aa   : > { %v957_v26 = vmul.f32 0.15, %v891_v21  ;;  %2625 = vmatprep.mubr.f32.mxu1 %v970_v23  ;;  %vm941_vm9 = vcmp.ge.f32.partialorder %v891_v21, 0.0 }
 0x2ab   : > { %v956_v0 = vmul.f32 0.15, %v886_v3  ;;  %v2577_v28 = vpop.f32.mrb[24].mxu0  ;;  %2626 = vmatmul.mubr.f32.gmra.mrb[20].mxu1 %v971_v27  ;;  %vm940_vm8 = vcmp.ge.f32.partialorder %v886_v3, 0.0 }
 0x2ac   : > { %v901_v30 = vadd.f32 %v2577_v28, %v3496_v61  ;;  %2944 = vmatpush3.bf16.msra.mxu1 %v3145_v9  ;;  %v895_v32 = vpop.f32.mrb[25].mxu0  ;;  %v973_v44 = vsel %vm941_vm9, %v891_v21, %v957_v26 }
 0x2ad   : > { %v896_v6 = vadd.f32 %v3496_v61, %v895_v32  ;;  %v972_v33 = vsel %vm940_vm8, %v886_v3, %v956_v0  ;;  %2946 = vmatprep.subr.bf16.mxu1 %v3167_v15 }
 0x2ae   : > { %v959_v35 = vmul.f32 0.15, %v901_v30  ;;  %2628 = vmatprep.mubr.f32.mxu1 %v972_v33  ;;  %vm943_vm11 = vcmp.ge.f32.partialorder %v901_v30, 0.0 }
 0x2af   : > { %v958_v36 = vmul.f32 0.15, %v896_v6  ;;  %v2580_v46 = vpop.f32.mrb[26].mxu0  ;;  %2629 = vmatmul.mubr.f32.gmra.mrb[22].mxu1 %v973_v44  ;;  %vm942_vm10 = vcmp.ge.f32.partialorder %v896_v6, 0.0 }
 0x2b0   : > { %v911_v39 = vadd.f32 %v2580_v46, %v3496_v61  ;;  %2948 = vmatpush3.bf16.msra.mxu1 %v3167_v15  ;;  %v905_v49 = vpop.f32.mrb[27].mxu0  ;;  %v975_v52 = vsel %vm943_vm11, %v901_v30, %v959_v35 }
 0x2b1   : > { %v906_v9 = vadd.f32 %v3496_v61, %v905_v49  ;;  %v974_v41 = vsel %vm942_vm10, %v896_v6, %v958_v36  ;;  %2950 = vmatprep.subr.bf16.mxu1 %v3181_v20 }
 0x2b2   : > { %v961_v43 = vmul.f32 0.15, %v911_v39  ;;  %2631 = vmatprep.mubr.f32.mxu1 %v974_v41  ;;  %vm945_vm13 = vcmp.ge.f32.partialorder %v911_v39, 0.0 }
 0x2b3   : > { %v960_v45 = vmul.f32 0.15, %v906_v9  ;;  %v2583_v55 = vpop.f32.mrb[28].mxu0  ;;  %2632 = vmatmul.mubr.f32.gmra.mrb[24].mxu1 %v975_v52  ;;  %vm944_vm12 = vcmp.ge.f32.partialorder %v906_v9, 0.0 }
 0x2b4   : > { %v921_v58 = vadd.f32 %v2583_v55, %v3496_v61  ;;  %2952 = vmatpush3.bf16.msra.mxu1 %v3181_v20  ;;  %v915_v24 = vpop.f32.mrb[29].mxu0  ;;  %v977_v56 = vsel %vm945_vm13, %v911_v39, %v961_v43 }
 0x2b5   : > { %v916_v15 = vadd.f32 %v3496_v61, %v915_v24  ;;  %v976_v50 = vsel %vm944_vm12, %v906_v9, %v960_v45  ;;  %2954 = vmatprep.subr.bf16.mxu1 %v3195_v25 }
 0x2b6   : > { %v963_v54 = vmul.f32 0.15, %v921_v58  ;;  %2634 = vmatprep.mubr.f32.mxu1 %v976_v50  ;;  %vm947_vm15 = vcmp.ge.f32.partialorder %v921_v58, 0.0 }
 0x2b7   : > { %v962_v57 = vmul.f32 0.15, %v916_v15  ;;  %v2586_v59 = vpop.f32.mrb[30].mxu0  ;;  %2635 = vmatmul.mubr.f32.gmra.mrb[26].mxu1 %v977_v56  ;;  %vm946_vm14 = vcmp.ge.f32.partialorder %v916_v15, 0.0 }
 0x2b8   : > { %v931_v60 = vadd.f32 %v2586_v59, %v3496_v61  ;;  %2956 = vmatpush3.bf16.msra.mxu1 %v3195_v25  ;;  %v925_v63 = vpop.f32.mrb[31].mxu0  ;;  %v979_v4 = vsel %vm947_vm15, %v921_v58, %v963_v54 }
 0x2b9   : > { %v926_v20 = vadd.f32 %v3496_v61, %v925_v63  ;;  %v978_v1 = vsel %vm946_vm14, %v916_v15, %v962_v57  ;;  %2958 = vmatprep.subr.bf16.mxu1 %v3225_v37 }
 0x2ba   : > { %v965_v2 = vmul.f32 0.15, %v931_v60  ;;  %2637 = vmatprep.mubr.f32.mxu1 %v978_v1  ;;  %vm949_vm2 = vcmp.ge.f32.partialorder %v931_v60, 0.0 }
 0x2bb   : > { %v964_v5 = vmul.f32 0.15, %v926_v20  ;;  %2638 = vmatmul.mubr.f32.gmra.mrb[28].mxu1 %v979_v4  ;;  %v2647_v7 = vpop.f32.mrb[32].mxu0  ;;  %vm948_vm1 = vcmp.ge.f32.partialorder %v926_v20, 0.0 }
 0x2bc   : > { %v1312_v8 = vadd.f32 %v2647_v7, %v3312_v62  ;;  %2960 = vmatpush3.bf16.msra.mxu1 %v3225_v37  ;;  %v1306_v10 = vpop.f32.mrb[33].mxu0  ;;  %v981_v13 = vsel %vm949_vm2, %v931_v60, %v965_v2 }
 0x2bd   : > { %v1307_v25 = vadd.f32 %v3312_v62, %v1306_v10  ;;  %v980_v11 = vsel %vm948_vm1, %v926_v20, %v964_v5  ;;  %2962 = vmatprep.subr.bf16.mxu1 %v3235_v40 }
 0x2be   : > { %v1402_v12 = vmul.f32 0.15, %v1312_v8  ;;  %2640 = vmatprep.mubr.f32.mxu1 %v980_v11  ;;  %vm1386_vm0 = vcmp.ge.f32.partialorder %v1312_v8, 0.0 }
 0x2bf   : > { %v1401_v14 = vmul.f32 0.15, %v1307_v25  ;;  %2641 = vmatmul.mubr.f32.gmra.mrb[30].mxu1 %v981_v13  ;;  %v2650_v16 = vpop.f32.mrb[34].mxu0  ;;  %vm1385_vm3 = vcmp.ge.f32.partialorder %v1307_v25, 0.0 }
 0x2c0   : > { %v1322_v17 = vadd.f32 %v2650_v16, %v3312_v62  ;;  %2964 = vmatpush3.bf16.msra.mxu1 %v3235_v40  ;;  %v1316_v18 = vpop.f32.mrb[35].mxu0  ;;  %v1418_v21 = vsel %vm1386_vm0, %v1312_v8, %v1402_v12  ;;  %vm1150_vm0 = vcmask 31744  }
 0x2c1   : > { %v1317_v37 = vadd.f32 %v3312_v62, %v1316_v18  ;;  %v1417_v19 = vsel %vm1385_vm3, %v1307_v25, %v1401_v14  ;;  %3029 = vmatprep.subr.bf16.mxu1 %v3350_v29 }
 0x2c2   : > { %v1404_v22 = vmul.f32 0.15, %v1322_v17  ;;  %2701 = vmatprep.mubr.f32.mxu1 %v1417_v19  ;;  %vm1388_vm5 = vcmp.ge.f32.partialorder %v1322_v17, 0.0 }
 0x2c3   : > { %v1403_v3 = vmul.f32 0.15, %v1317_v37  ;;  %v2653_v23 = vpop.f32.mrb[36].mxu0  ;;  %2702 = vmatmul.mubr.f32.vlgmr.msra.gmra.mrb[32].mxu1 %v1418_v21  ;;  %vm1387_vm4 = vcmp.ge.f32.partialorder %v1317_v37, 0.0 }
 0x2c4   : > { %v1332_v26 = vadd.f32 %v2653_v23, %v3312_v62  ;;  %v1326_v27 = vpop.f32.mrb[37].mxu0  ;;  %3037 = vmatpush3.bf16.msra.mxu1 %v3350_v29  ;;  %v1420_v30 = vsel %vm1388_vm5, %v1322_v17, %v1404_v22 }
 0x2c5   : > { %v1327_v40 = vadd.f32 %v3312_v62, %v1326_v27  ;;  %v1419_v0 = vsel %vm1387_vm4, %v1317_v37, %v1403_v3  ;;  %3030 = vmatprep.subr.bf16.mxu1 %v3355_v31 }
 0x2c6   : > { %v1406_v28 = vmul.f32 0.15, %v1332_v26  ;;  %2704 = vmatprep.mubr.f32.mxu1 %v1419_v0  ;;  %vm1390_vm7 = vcmp.ge.f32.partialorder %v1332_v26, 0.0 }
 0x2c7   : > { %v1405_v32 = vmul.f32 0.15, %v1327_v40  ;;  %v2656_v6 = vpop.f32.mrb[38].mxu0  ;;  %2705 = vmatmul.mubr.f32.gmra.mrb[34].mxu1 %v1420_v30  ;;  %vm1389_vm6 = vcmp.ge.f32.partialorder %v1327_v40, 0.0 }
 0x2c8   : > { %v1342_v33 = vadd.f32 %v2656_v6, %v3312_v62  ;;  %v1336_v35 = vpop.f32.mrb[39].mxu0  ;;  %3038 = vmatpush3.bf16.msra.mxu1 %v3355_v31  ;;  %v1422_v39 = vsel %vm1390_vm7, %v1332_v26, %v1406_v28 }
 0x2c9   : > { %v1337_v44 = vadd.f32 %v3312_v62, %v1336_v35  ;;  %v1421_v36 = vsel %vm1389_vm6, %v1327_v40, %v1405_v32  ;;  %3031 = vmatprep.subr.bf16.mxu1 %v3366_v34 }
 0x2ca   : > { %v1408_v46 = vmul.f32 0.15, %v1342_v33  ;;  %2707 = vmatprep.mubr.f32.mxu1 %v1421_v36  ;;  %vm1392_vm9 = vcmp.ge.f32.partialorder %v1342_v33, 0.0 }
 0x2cb   : > { %v1407_v49 = vmul.f32 0.15, %v1337_v44  ;;  %v2659_v9 = vpop.f32.mrb[40].mxu0  ;;  %2708 = vmatmul.mubr.f32.gmra.mrb[36].mxu1 %v1422_v39  ;;  %vm1391_vm8 = vcmp.ge.f32.partialorder %v1337_v44, 0.0 }
 0x2cc   : > { %v1352_v41 = vadd.f32 %v2659_v9, %v3312_v62  ;;  %v1346_v43 = vpop.f32.mrb[41].mxu0  ;;  %3039 = vmatpush3.bf16.msra.mxu1 %v3366_v34  ;;  %v1424_v58 = vsel %vm1392_vm9, %v1342_v33, %v1408_v46 }
 0x2cd   : > { %v1347_v52 = vadd.f32 %v3312_v62, %v1346_v43  ;;  %v1423_v45 = vsel %vm1391_vm8, %v1337_v44, %v1407_v49  ;;  %3032 = vmatprep.subr.bf16.mxu1 %v3376_v38 }
 0x2ce   : > { %v1410_v55 = vmul.f32 0.15, %v1352_v41  ;;  %2710 = vmatprep.mubr.f32.mxu1 %v1423_v45  ;;  %vm1394_vm11 = vcmp.ge.f32.partialorder %v1352_v41, 0.0 }
 0x2cf   : > { %v1409_v24 = vmul.f32 0.15, %v1347_v52  ;;  %v2662_v15 = vpop.f32.mrb[42].mxu0  ;;  %2711 = vmatmul.mubr.f32.gmra.mrb[38].mxu1 %v1424_v58  ;;  %vm1393_vm10 = vcmp.ge.f32.partialorder %v1347_v52, 0.0 }
 0x2d0   : > { %v1362_v50 = vadd.f32 %v2662_v15, %v3312_v62  ;;  %v1356_v54 = vpop.f32.mrb[43].mxu0  ;;  %3040 = vmatpush3.bf16.msra.mxu1 %v3376_v38  ;;  %v1426_v60 = vsel %vm1394_vm11, %v1352_v41, %v1410_v55 }
 0x2d1   : > { %v1357_v56 = vadd.f32 %v3312_v62, %v1356_v54  ;;  %v1425_v57 = vsel %vm1393_vm10, %v1347_v52, %v1409_v24  ;;  %3033 = vmatprep.subr.bf16.mxu1 %v3386_v42 }
 0x2d2   : > { %v1412_v59 = vmul.f32 0.15, %v1362_v50  ;;  %2713 = vmatprep.mubr.f32.mxu1 %v1425_v57  ;;  %vm1396_vm13 = vcmp.ge.f32.partialorder %v1362_v50, 0.0 }
 0x2d3   : > { %v1411_v63 = vmul.f32 0.15, %v1357_v56  ;;  %v2665_v20 = vpop.f32.mrb[44].mxu0  ;;  %2714 = vmatmul.mubr.f32.gmra.mrb[40].mxu1 %v1426_v60  ;;  %vm1395_vm12 = vcmp.ge.f32.partialorder %v1357_v56, 0.0 }
 0x2d4   : > { %v1372_v1 = vadd.f32 %v2665_v20, %v3312_v62  ;;  %v1366_v2 = vpop.f32.mrb[45].mxu0  ;;  %3041 = vmatpush3.bf16.msra.mxu1 %v3386_v42  ;;  %v1428_v8 = vsel %vm1396_vm13, %v1362_v50, %v1412_v59 }
 0x2d5   : > { %v1367_v4 = vadd.f32 %v3312_v62, %v1366_v2  ;;  %v1427_v5 = vsel %vm1395_vm12, %v1357_v56, %v1411_v63  ;;  %3034 = vmatprep.subr.bf16.mxu1 %v3396_v47 }
 0x2d6   : > { %v1414_v7 = vmul.f32 0.15, %v1372_v1  ;;  %2716 = vmatprep.mubr.f32.mxu1 %v1427_v5  ;;  %vm1398_vm15 = vcmp.ge.f32.partialorder %v1372_v1, 0.0 }
 0x2d7   : > { %v1413_v10 = vmul.f32 0.15, %v1367_v4  ;;  %v2668_v25 = vpop.f32.mrb[46].mxu0  ;;  %2717 = vmatmul.mubr.f32.gmra.mrb[42].mxu1 %v1428_v8  ;;  %vm1397_vm14 = vcmp.ge.f32.partialorder %v1367_v4, 0.0 }
 0x2d8   : > { %v1382_v11 = vadd.f32 %v2668_v25, %v3312_v62  ;;  %v1376_v12 = vpop.f32.mrb[47].mxu0  ;;  %3042 = vmatpush3.bf16.msra.mxu1 %v3396_v47  ;;  %v1430_v17 = vsel %vm1398_vm15, %v1372_v1, %v1414_v7 }
 0x2d9   : > { %v1377_v13 = vadd.f32 %v3312_v62, %v1376_v12  ;;  %v1429_v14 = vsel %vm1397_vm14, %v1367_v4, %v1413_v10  ;;  %3035 = vmatprep.subr.bf16.mxu1 %v3406_v51  ;;  %v3564_v62 = vld [vmem:[%s3726_s6] ss:$0 sm:$0xff] }
 0x2da   : > { %v1416_v16 = vmul.f32 0.15, %v1382_v11  ;;  %2719 = vmatprep.mubr.f32.mxu1 %v1429_v14  ;;  %vm1400_vm2 = vcmp.ge.f32.partialorder %v1382_v11, 0.0 }
 0x2db   : > { %v1415_v18 = vmul.f32 0.15, %v1377_v13  ;;  %2720 = vmatmul.mubr.f32.gmra.mrb[44].mxu1 %v1430_v17  ;;  %vm1399_vm1 = vcmp.ge.f32.partialorder %v1377_v13, 0.0 }
 0x2dc   : > { %3043 = vmatpush3.bf16.msra.mxu1 %v3406_v51  ;;  %v1432_v19 = vsel %vm1400_vm2, %v1382_v11, %v1416_v16 }
 0x2dd   : > { %v1431_v37 = vsel %vm1399_vm1, %v1377_v13, %v1415_v18  ;;  %3036 = vmatprep.subr.bf16.mxu1 %v3488_v48 }
 0x2de   : > { %2722 = vmatprep.mubr.f32.mxu1 %v1431_v37 }
 0x2df   : > { %2723 = vmatmul.mubr.f32.gmra.mrb[46].mxu1 %v1432_v19 }
 0x2e0   : > { %3044 = vmatpush3.bf16.msra.mxu1 %v3488_v48 }
 0x376   : > { %v2621_v21 = vpop.f32.mrb[16].mxu1 }
 0x377   : > { %v1077_v22 = vadd.f32 %v2621_v21, %v3564_v62  ;;  %v1071_v3 = vpop.f32.mrb[17].mxu1 }
 0x378   : > { %v1072_v23 = vadd.f32 %v3564_v62, %v1071_v3 }
 0x379   : > { %1152 = vst.msk [vmem:[%s3571_s19 + $0x8] sm:$0xff] %vm1150_vm0, %v1077_v22 }
 0x37a   : > { %1151 = vst.msk [vmem:[%s3571_s19] sm:$0xff] %vm1150_vm0, %v1072_v23  ;;  %v2624_v26 = vpop.f32.mrb[18].mxu1 }
 0x37b   : > { %v1087_v27 = vadd.f32 %v2624_v26, %v3564_v62  ;;  %v1081_v40 = vpop.f32.mrb[19].mxu1 }
 0x37c   : > { %v1082_v0 = vadd.f32 %v3564_v62, %v1081_v40 }
 0x37d   : > { %1154 = vst.msk [vmem:[%s3571_s19 + $0x18] sm:$0xff] %vm1150_vm0, %v1087_v27 }
 0x37e   : > { %1153 = vst.msk [vmem:[%s3571_s19 + $0x10] sm:$0xff] %vm1150_vm0, %v1082_v0  ;;  %v2627_v28 = vpop.f32.mrb[20].mxu1 }
 0x37f   : > { %v1097_v30 = vadd.f32 %v2627_v28, %v3564_v62  ;;  %v1091_v32 = vpop.f32.mrb[21].mxu1 }
 0x380   : > { %v1092_v6 = vadd.f32 %v3564_v62, %v1091_v32 }
 0x381   : > { %1156 = vst.msk [vmem:[%s3571_s19 + $0x28] sm:$0xff] %vm1150_vm0, %v1097_v30 }
 0x382   : > { %1155 = vst.msk [vmem:[%s3571_s19 + $0x20] sm:$0xff] %vm1150_vm0, %v1092_v6  ;;  %v2630_v33 = vpop.f32.mrb[22].mxu1 }
 0x383   : > { %v1107_v35 = vadd.f32 %v2630_v33, %v3564_v62  ;;  %v1101_v44 = vpop.f32.mrb[23].mxu1 }
 0x384   : > { %v1102_v36 = vadd.f32 %v3564_v62, %v1101_v44 }
 0x385   : > { %1158 = vst.msk [vmem:[%s3571_s19 + $0x38] sm:$0xff] %vm1150_vm0, %v1107_v35 }
 0x386   : > { %1157 = vst.msk [vmem:[%s3571_s19 + $0x30] sm:$0xff] %vm1150_vm0, %v1102_v36  ;;  %v2633_v46 = vpop.f32.mrb[24].mxu1 }
 0x387   : > { %v1117_v39 = vadd.f32 %v2633_v46, %v3564_v62  ;;  %v1111_v49 = vpop.f32.mrb[25].mxu1 }
 0x388   : > { %v1112_v9 = vadd.f32 %v3564_v62, %v1111_v49 }
 0x389   : > { %1160 = vst.msk [vmem:[%s3571_s19 + $0x48] sm:$0xff] %vm1150_vm0, %v1117_v39 }
 0x38a   : > { %1159 = vst.msk [vmem:[%s3571_s19 + $0x40] sm:$0xff] %vm1150_vm0, %v1112_v9  ;;  %v2636_v41 = vpop.f32.mrb[26].mxu1 }
 0x38b   : > { %v1127_v43 = vadd.f32 %v2636_v41, %v3564_v62  ;;  %v1121_v52 = vpop.f32.mrb[27].mxu1 }
 0x38c   : > { %v1122_v45 = vadd.f32 %v3564_v62, %v1121_v52 }
 0x38d   : > { %1162 = vst.msk [vmem:[%s3571_s19 + $0x58] sm:$0xff] %vm1150_vm0, %v1127_v43 }
 0x38e   : > { %1161 = vst.msk [vmem:[%s3571_s19 + $0x50] sm:$0xff] %vm1150_vm0, %v1122_v45  ;;  %v2639_v55 = vpop.f32.mrb[28].mxu1 }
 0x38f   : > { %v1137_v58 = vadd.f32 %v2639_v55, %v3564_v62  ;;  %v1131_v24 = vpop.f32.mrb[29].mxu1 }
 0x390   : > { %v1132_v15 = vadd.f32 %v3564_v62, %v1131_v24 }
 0x391   : > { %1164 = vst.msk [vmem:[%s3571_s19 + $0x68] sm:$0xff] %vm1150_vm0, %v1137_v58 }
 0x392   : > { %1163 = vst.msk [vmem:[%s3571_s19 + $0x60] sm:$0xff] %vm1150_vm0, %v1132_v15  ;;  %v2642_v50 = vpop.f32.mrb[30].mxu1 }
 0x393   : > { %v1147_v54 = vadd.f32 %v2642_v50, %v3564_v62  ;;  %v1141_v56 = vpop.f32.mrb[31].mxu1 }
 0x394   : > { %v1142_v57 = vadd.f32 %v3564_v62, %v1141_v56  ;;  %v3053_v56 = vld [vmem:[%s3724_s4] ss:$0 sm:$0xff] }
 0x395   : > { %1166 = vst.msk [vmem:[%s3571_s19 + $0x78] sm:$0xff] %vm1150_vm0, %v1147_v54 }
 0x396   : > { %1165 = vst.msk [vmem:[%s3571_s19 + $0x70] sm:$0xff] %vm1150_vm0, %v1142_v57  ;;  %v2703_v59 = vpop.f32.mrb[32].mxu1 }
 0x397   : > { %v1528_v60 = vadd.f32 %v2703_v59, %v3414_v53  ;;  %v1522_v63 = vpop.f32.mrb[33].mxu1 }
 0x398   : > { %v1523_v20 = vadd.f32 %v3414_v53, %v1522_v63 }
 0x399   : > { %v1618_v1 = vmul.f32 0.15, %v1528_v60  ;;  %vm1602_vm3 = vcmp.ge.f32.partialorder %v1528_v60, 0.0 }
 0x39a   : > { %v1617_v2 = vmul.f32 0.15, %v1523_v20  ;;  %v2706_v4 = vpop.f32.mrb[34].mxu1  ;;  %vm1601_vm4 = vcmp.ge.f32.partialorder %v1523_v20, 0.0 }
 0x39b   : > { %v1538_v5 = vadd.f32 %v2706_v4, %v3414_v53  ;;  %v1532_v7 = vpop.f32.mrb[35].mxu1  ;;  %v1634_v25 = vsel %vm1602_vm3, %v1528_v60, %v1618_v1 }
 0x39c   : > { %v1533_v8 = vadd.f32 %v3414_v53, %v1532_v7  ;;  %v1633_v10 = vsel %vm1601_vm4, %v1523_v20, %v1617_v2 }
 0x39d   : > { %v1620_v11 = vmul.f32 0.15, %v1538_v5  ;;  %2757 = vmatprep.mubr.f32.mxu0 %v1633_v10  ;;  %vm1604_vm6 = vcmp.ge.f32.partialorder %v1538_v5, 0.0 }
 0x39e   : > { %v1619_v12 = vmul.f32 0.15, %v1533_v8  ;;  %v2709_v13 = vpop.f32.mrb[36].mxu1  ;;  %2758 = vmatmul.mubr.f32.vlgmr.msra.gmra.mrb[48].mxu0 %v1634_v25  ;;  %vm1603_vm5 = vcmp.ge.f32.partialorder %v1533_v8, 0.0 }
 0x39f   : > { %v1548_v14 = vadd.f32 %v2709_v13, %v3414_v53  ;;  %v1542_v16 = vpop.f32.mrb[37].mxu1  ;;  %3000 = vmatpush3.bf16.msra.mxu0 %v3350_v29  ;;  %v1636_v19 = vsel %vm1604_vm6, %v1538_v5, %v1620_v11 }
 0x3a0   : > { %v1543_v17 = vadd.f32 %v3414_v53, %v1542_v16  ;;  %v1635_v18 = vsel %vm1603_vm5, %v1533_v8, %v1619_v12  ;;  %3002 = vmatprep.subr.bf16.mxu0 %v3355_v31 }
 0x3a1   : > { %v1622_v37 = vmul.f32 0.15, %v1548_v14  ;;  %2760 = vmatprep.mubr.f32.mxu0 %v1635_v18  ;;  %vm1606_vm8 = vcmp.ge.f32.partialorder %v1548_v14, 0.0 }
 0x3a2   : > { %v1621_v21 = vmul.f32 0.15, %v1543_v17  ;;  %v2712_v22 = vpop.f32.mrb[38].mxu1  ;;  %2761 = vmatmul.mubr.f32.gmra.mrb[50].mxu0 %v1636_v19  ;;  %vm1605_vm7 = vcmp.ge.f32.partialorder %v1543_v17, 0.0 }
 0x3a3   : > { %v1558_v3 = vadd.f32 %v2712_v22, %v3414_v53  ;;  %v1552_v23 = vpop.f32.mrb[39].mxu1  ;;  %3004 = vmatpush3.bf16.msra.mxu0 %v3355_v31  ;;  %v1638_v40 = vsel %vm1606_vm8, %v1548_v14, %v1622_v37 }
 0x3a4   : > { %v1553_v29 = vadd.f32 %v3414_v53, %v1552_v23  ;;  %v1637_v26 = vsel %vm1605_vm7, %v1543_v17, %v1621_v21  ;;  %3006 = vmatprep.subr.bf16.mxu0 %v3366_v34 }
 0x3a5   : > { %v1624_v27 = vmul.f32 0.15, %v1558_v3  ;;  %2763 = vmatprep.mubr.f32.mxu0 %v1637_v26  ;;  %vm1608_vm10 = vcmp.ge.f32.partialorder %v1558_v3, 0.0 }
 0x3a6   : > { %v1623_v0 = vmul.f32 0.15, %v1553_v29  ;;  %v2715_v28 = vpop.f32.mrb[40].mxu1  ;;  %2764 = vmatmul.mubr.f32.gmra.mrb[52].mxu0 %v1638_v40  ;;  %vm1607_vm9 = vcmp.ge.f32.partialorder %v1553_v29, 0.0 }
 0x3a7   : > { %v1568_v30 = vadd.f32 %v2715_v28, %v3414_v53  ;;  %v1562_v32 = vpop.f32.mrb[41].mxu1  ;;  %3008 = vmatpush3.bf16.msra.mxu0 %v3366_v34  ;;  %v1640_v35 = vsel %vm1608_vm10, %v1558_v3, %v1624_v27 }
 0x3a8   : > { %v1563_v31 = vadd.f32 %v3414_v53, %v1562_v32  ;;  %v1639_v6 = vsel %vm1607_vm9, %v1553_v29, %v1623_v0  ;;  %3010 = vmatprep.subr.bf16.mxu0 %v3376_v38 }
 0x3a9   : > { %v1626_v33 = vmul.f32 0.15, %v1568_v30  ;;  %2766 = vmatprep.mubr.f32.mxu0 %v1639_v6  ;;  %vm1610_vm12 = vcmp.ge.f32.partialorder %v1568_v30, 0.0 }
 0x3aa   : > { %v1625_v44 = vmul.f32 0.15, %v1563_v31  ;;  %v2718_v36 = vpop.f32.mrb[42].mxu1  ;;  %2767 = vmatmul.mubr.f32.gmra.mrb[54].mxu0 %v1640_v35  ;;  %vm1609_vm11 = vcmp.ge.f32.partialorder %v1563_v31, 0.0 }
 0x3ab   : > { %v1578_v46 = vadd.f32 %v2718_v36, %v3414_v53  ;;  %v1572_v39 = vpop.f32.mrb[43].mxu1  ;;  %3012 = vmatpush3.bf16.msra.mxu0 %v3376_v38  ;;  %v1642_v41 = vsel %vm1610_vm12, %v1568_v30, %v1626_v33 }
 0x3ac   : > { %v1573_v34 = vadd.f32 %v3414_v53, %v1572_v39  ;;  %v1641_v49 = vsel %vm1609_vm11, %v1563_v31, %v1625_v44  ;;  %3014 = vmatprep.subr.bf16.mxu0 %v3386_v42 }
 0x3ad   : > { %v1628_v9 = vmul.f32 0.15, %v1578_v46  ;;  %2769 = vmatprep.mubr.f32.mxu0 %v1641_v49  ;;  %vm1612_vm14 = vcmp.ge.f32.partialorder %v1578_v46, 0.0 }
 0x3ae   : > { %v1627_v43 = vmul.f32 0.15, %v1573_v34  ;;  %v2721_v52 = vpop.f32.mrb[44].mxu1  ;;  %2770 = vmatmul.mubr.f32.gmra.mrb[56].mxu0 %v1642_v41  ;;  %vm1611_vm13 = vcmp.ge.f32.partialorder %v1573_v34, 0.0 }
 0x3af   : > { %v1588_v45 = vadd.f32 %v2721_v52, %v3414_v53  ;;  %v1582_v55 = vpop.f32.mrb[45].mxu1  ;;  %3016 = vmatpush3.bf16.msra.mxu0 %v3386_v42  ;;  %v1644_v15 = vsel %vm1612_vm14, %v1578_v46, %v1628_v9 }
 0x3b0   : > { %v1583_v38 = vadd.f32 %v3414_v53, %v1582_v55  ;;  %v1643_v58 = vsel %vm1611_vm13, %v1573_v34, %v1627_v43  ;;  %3018 = vmatprep.subr.bf16.mxu0 %v3396_v47 }
 0x3b1   : > { %v1630_v24 = vmul.f32 0.15, %v1588_v45  ;;  %2772 = vmatprep.mubr.f32.mxu0 %v1643_v58  ;;  %vm1614_vm1 = vcmp.ge.f32.partialorder %v1588_v45, 0.0 }
 0x3b2   : > { %v1629_v50 = vmul.f32 0.15, %v1583_v38  ;;  %v2724_v54 = vpop.f32.mrb[46].mxu1  ;;  %2773 = vmatmul.mubr.f32.gmra.mrb[58].mxu0 %v1644_v15  ;;  %vm1613_vm15 = vcmp.ge.f32.partialorder %v1583_v38, 0.0 }
 0x3b3   : > { %v1598_v57 = vadd.f32 %v3053_v56, %v2724_v54  ;;  %v1592_v59 = vpop.f32.mrb[47].mxu1  ;;  %3020 = vmatpush3.bf16.msra.mxu0 %v3396_v47  ;;  %v1646_v63 = vsel %vm1614_vm1, %v1588_v45, %v1630_v24 }
 0x3b4   : > { %v1593_v42 = vadd.f32 %v3053_v56, %v1592_v59  ;;  %v1645_v53 = vsel %vm1613_vm15, %v1583_v38, %v1629_v50  ;;  %3022 = vmatprep.subr.bf16.mxu0 %v3406_v51 }
 0x3b5   : > { %v1632_v60 = vmul.f32 0.15, %v1598_v57  ;;  %2775 = vmatprep.mubr.f32.mxu0 %v1645_v53  ;;  %vm1616_vm3 = vcmp.ge.f32.partialorder %v1598_v57, 0.0 }
 0x3b6   : > { %v1631_v20 = vmul.f32 0.15, %v1593_v42  ;;  %2776 = vmatmul.mubr.f32.gmra.mrb[60].mxu0 %v1646_v63  ;;  %vm1615_vm2 = vcmp.ge.f32.partialorder %v1593_v42, 0.0 }
 0x3b7   : > { %3024 = vmatpush3.bf16.msra.mxu0 %v3406_v51  ;;  %v1648_v2 = vsel %vm1616_vm3, %v1598_v57, %v1632_v60 }
 0x3b8   : > { %v1647_v1 = vsel %vm1615_vm2, %v1593_v42, %v1631_v20  ;;  %3026 = vmatprep.subr.bf16.mxu0 %v3488_v48 }
 0x3b9   : > { %2778 = vmatprep.mubr.f32.mxu0 %v1647_v1 }
 0x3ba   : > { %2779 = vmatmul.mubr.f32.gmra.mrb[62].mxu0 %v1648_v2 }
 0x3bb   : > { %3028 = vmatpush3.bf16.msra.mxu0 %v3488_v48 }
 0x471   : > { %v2759_v47 = vpop.f32.mrb[48].mxu0 }
 0x472   : > { %v1744_v4 = vadd.f32 %v2759_v47, %v3496_v61  ;;  %v1738_v5 = vpop.f32.mrb[49].mxu0 }
 0x473   : > { %v1739_v7 = vadd.f32 %v3496_v61, %v1738_v5 }
 0x474   : > { %v1834_v8 = vmul.f32 0.15, %v1744_v4  ;;  %vm1818_vm4 = vcmp.ge.f32.partialorder %v1744_v4, 0.0 }
 0x475   : > { %v1833_v10 = vmul.f32 0.15, %v1739_v7  ;;  %v2762_v25 = vpop.f32.mrb[50].mxu0  ;;  %vm1817_vm5 = vcmp.ge.f32.partialorder %v1739_v7, 0.0 }
 0x476   : > { %v1754_v51 = vadd.f32 %v2762_v25, %v3496_v61  ;;  %v1748_v11 = vpop.f32.mrb[51].mxu0  ;;  %v1850_v14 = vsel %vm1818_vm4, %v1744_v4, %v1834_v8 }
 0x477   : > { %v1749_v12 = vadd.f32 %v3496_v61, %v1748_v11  ;;  %v1849_v13 = vsel %vm1817_vm5, %v1739_v7, %v1833_v10 }
 0x478   : > { %v1836_v16 = vmul.f32 0.15, %v1754_v51  ;;  %2813 = vmatprep.mubr.f32.mxu0 %v1849_v13  ;;  %vm1820_vm7 = vcmp.ge.f32.partialorder %v1754_v51, 0.0 }
 0x479   : > { %v1835_v48 = vmul.f32 0.15, %v1749_v12  ;;  %v2765_v17 = vpop.f32.mrb[52].mxu0  ;;  %2814 = vmatmul.mubr.f32.vlgmr.msra.gmra.mrb[64].mxu0 %v1850_v14  ;;  %vm1819_vm6 = vcmp.ge.f32.partialorder %v1749_v12, 0.0 }
 0x47a   : > { %v1764_v18 = vadd.f32 %v2765_v17, %v3496_v61  ;;  %v1758_v37 = vpop.f32.mrb[53].mxu0  ;;  %v1852_v3 = vsel %vm1820_vm7, %v1754_v51, %v1836_v16 }
 0x47b   : > { %v1759_v19 = vadd.f32 %v3496_v61, %v1758_v37  ;;  %v1851_v21 = vsel %vm1819_vm6, %v1749_v12, %v1835_v48 }
 0x47c   : > { %v1838_v22 = vmul.f32 0.15, %v1764_v18  ;;  %2816 = vmatprep.mubr.f32.mxu0 %v1851_v21  ;;  %vm1822_vm9 = vcmp.ge.f32.partialorder %v1764_v18, 0.0 }
 0x47d   : > { %v1837_v23 = vmul.f32 0.15, %v1759_v19  ;;  %v2768_v29 = vpop.f32.mrb[54].mxu0  ;;  %2817 = vmatmul.mubr.f32.gmra.mrb[66].mxu0 %v1852_v3  ;;  %vm1821_vm8 = vcmp.ge.f32.partialorder %v1759_v19, 0.0 }
 0x47e   : > { %v1774_v26 = vadd.f32 %v2768_v29, %v3496_v61  ;;  %v1768_v27 = vpop.f32.mrb[55].mxu0  ;;  %v1854_v30 = vsel %vm1822_vm9, %v1764_v18, %v1838_v22 }
 0x47f   : > { %v1769_v40 = vadd.f32 %v3496_v61, %v1768_v27  ;;  %v1853_v0 = vsel %vm1821_vm8, %v1759_v19, %v1837_v23 }
 0x480   : > { %v1840_v28 = vmul.f32 0.15, %v1774_v26  ;;  %2819 = vmatprep.mubr.f32.mxu0 %v1853_v0  ;;  %vm1824_vm10 = vcmp.ge.f32.partialorder %v1774_v26, 0.0 }
 0x481   : > { %v1839_v32 = vmul.f32 0.15, %v1769_v40  ;;  %v2771_v31 = vpop.f32.mrb[56].mxu0  ;;  %2820 = vmatmul.mubr.f32.gmra.mrb[68].mxu0 %v1854_v30  ;;  %vm1823_vm11 = vcmp.ge.f32.partialorder %v1769_v40, 0.0 }
 0x482   : > { %v1784_v6 = vadd.f32 %v2771_v31, %v3496_v61  ;;  %v1778_v33 = vpop.f32.mrb[57].mxu0  ;;  %v1856_v36 = vsel %vm1824_vm10, %v1774_v26, %v1840_v28 }
 0x483   : > { %v1779_v35 = vadd.f32 %v3496_v61, %v1778_v33  ;;  %v1855_v44 = vsel %vm1823_vm11, %v1769_v40, %v1839_v32 }
 0x484   : > { %v1842_v46 = vmul.f32 0.15, %v1784_v6  ;;  %2822 = vmatprep.mubr.f32.mxu1 %v1855_v44  ;;  %vm1826_vm13 = vcmp.ge.f32.partialorder %v1784_v6, 0.0 }
 0x485   : > { %v1841_v39 = vmul.f32 0.15, %v1779_v35  ;;  %v2774_v34 = vpop.f32.mrb[58].mxu0  ;;  %2823 = vmatmul.mubr.f32.vlgmr.msra.gmra.mrb[48].mxu1 %v1856_v36  ;;  %vm1825_vm12 = vcmp.ge.f32.partialorder %v1779_v35, 0.0 }
 0x486   : > { %v1794_v49 = vadd.f32 %v2774_v34, %v3496_v61  ;;  %v1788_v9 = vpop.f32.mrb[59].mxu0  ;;  %v1858_v45 = vsel %vm1826_vm13, %v1784_v6, %v1842_v46 }
 0x487   : > { %v1789_v41 = vadd.f32 %v3496_v61, %v1788_v9  ;;  %v1857_v43 = vsel %vm1825_vm12, %v1779_v35, %v1841_v39 }
 0x488   : > { %v1844_v52 = vmul.f32 0.15, %v1794_v49  ;;  %2825 = vmatprep.mubr.f32.mxu1 %v1857_v43  ;;  %vm1828_vm15 = vcmp.ge.f32.partialorder %v1794_v49, 0.0 }
 0x489   : > { %v1843_v55 = vmul.f32 0.15, %v1789_v41  ;;  %v2777_v38 = vpop.f32.mrb[60].mxu0  ;;  %2826 = vmatmul.mubr.f32.gmra.mrb[50].mxu1 %v1858_v45  ;;  %vm1827_vm14 = vcmp.ge.f32.partialorder %v1789_v41, 0.0 }
 0x48a   : > { %v1804_v58 = vadd.f32 %v2777_v38, %v3496_v61  ;;  %v1798_v24 = vpop.f32.mrb[61].mxu0  ;;  %v1860_v56 = vsel %vm1828_vm15, %v1794_v49, %v1844_v52 }
 0x48b   : > { %v1799_v15 = vadd.f32 %v3496_v61, %v1798_v24  ;;  %v1859_v50 = vsel %vm1827_vm14, %v1789_v41, %v1843_v55 }
 0x48c   : > { %v1846_v54 = vmul.f32 0.15, %v1804_v58  ;;  %2828 = vmatprep.mubr.f32.mxu1 %v1859_v50  ;;  %vm1830_vm2 = vcmp.ge.f32.partialorder %v1804_v58, 0.0 }
 0x48d   : > { %v1845_v57 = vmul.f32 0.15, %v1799_v15  ;;  %v2780_v59 = vpop.f32.mrb[62].mxu0  ;;  %2829 = vmatmul.mubr.f32.gmra.mrb[52].mxu1 %v1860_v56  ;;  %vm1829_vm1 = vcmp.ge.f32.partialorder %v1799_v15, 0.0 }
 0x48e   : > { %v1814_v42 = vadd.f32 %v2780_v59, %v3496_v61  ;;  %v1808_v53 = vpop.f32.mrb[63].mxu0  ;;  %v1862_v1 = vsel %vm1830_vm2, %v1804_v58, %v1846_v54 }
 0x48f   : > { %v1809_v60 = vadd.f32 %v3496_v61, %v1808_v53  ;;  %v1861_v63 = vsel %vm1829_vm1, %v1799_v15, %v1845_v57 }
 0x490   : > { %v1848_v20 = vmul.f32 0.15, %v1814_v42  ;;  %2831 = vmatprep.mubr.f32.mxu1 %v1861_v63  ;;  %vm1832_vm4 = vcmp.ge.f32.partialorder %v1814_v42, 0.0 }
 0x491   : > { %v1847_v2 = vmul.f32 0.15, %v1809_v60  ;;  %2832 = vmatmul.mubr.f32.gmra.mrb[54].mxu1 %v1862_v1  ;;  %vm1831_vm3 = vcmp.ge.f32.partialorder %v1809_v60, 0.0 }
 0x492   : > { %v1864_v4 = vsel %vm1832_vm4, %v1814_v42, %v1848_v20 }
 0x493   : > { %v1863_v47 = vsel %vm1831_vm3, %v1809_v60, %v1847_v2 }
 0x494   : > { %2834 = vmatprep.mubr.f32.mxu1 %v1863_v47 }
 0x495   : > { %2835 = vmatmul.mubr.f32.gmra.mrb[56].mxu1 %v1864_v4 }
 0x54c   : > { %v2815_v5 = vpop.f32.mrb[64].mxu0 }
 0x54d   : > { %v1960_v61 = vadd.f32 %v2815_v5, %v3564_v62  ;;  %v1954_v7 = vpop.f32.mrb[65].mxu0 }
 0x54e   : > { %v1955_v8 = vadd.f32 %v3564_v62, %v1954_v7 }
 0x54f   : > { %2206 = vst.msk [vmem:[%s3571_s19 + $0x88] sm:$0xff] %vm1150_vm0, %v1960_v61 }
 0x550   : > { %2205 = vst.msk [vmem:[%s3571_s19 + $0x80] sm:$0xff] %vm1150_vm0, %v1955_v8  ;;  %v2818_v10 = vpop.f32.mrb[66].mxu0 }
 0x551   : > { %v1970_v25 = vadd.f32 %v2818_v10, %v3564_v62  ;;  %v1964_v51 = vpop.f32.mrb[67].mxu0 }
 0x552   : > { %v1965_v11 = vadd.f32 %v3564_v62, %v1964_v51 }
 0x553   : > { %2208 = vst.msk [vmem:[%s3571_s19 + $0x98] sm:$0xff] %vm1150_vm0, %v1970_v25 }
 0x554   : > { %2207 = vst.msk [vmem:[%s3571_s19 + $0x90] sm:$0xff] %vm1150_vm0, %v1965_v11  ;;  %v2821_v12 = vpop.f32.mrb[68].mxu0 }
 0x555   : > { %v1980_v13 = vadd.f32 %v2821_v12, %v3564_v62  ;;  %v1974_v14 = vpop.f32.mrb[69].mxu0 }
 0x556   : > { %v1975_v16 = vadd.f32 %v3564_v62, %v1974_v14 }
 0x557   : > { %2210 = vst.msk [vmem:[%s3571_s19 + $0xa8] sm:$0xff] %vm1150_vm0, %v1980_v13 }
 0x558   : > { %2209 = vst.msk [vmem:[%s3571_s19 + $0xa0] sm:$0xff] %vm1150_vm0, %v1975_v16  ;;  %v2824_v48 = vpop.f32.mrb[48].mxu1 }
 0x559   : > { %v1990_v17 = vadd.f32 %v2824_v48, %v3564_v62  ;;  %v1984_v18 = vpop.f32.mrb[49].mxu1 }
 0x55a   : > { %v1985_v37 = vadd.f32 %v3564_v62, %v1984_v18 }
 0x55b   : > { %2212 = vst.msk [vmem:[%s3571_s19 + $0xb8] sm:$0xff] %vm1150_vm0, %v1990_v17 }
 0x55c   : > { %2211 = vst.msk [vmem:[%s3571_s19 + $0xb0] sm:$0xff] %vm1150_vm0, %v1985_v37  ;;  %v2827_v19 = vpop.f32.mrb[50].mxu1 }
 0x55d   : > { %v2000_v21 = vadd.f32 %v2827_v19, %v3564_v62  ;;  %v1994_v22 = vpop.f32.mrb[51].mxu1 }
 0x55e   : > { %v1995_v3 = vadd.f32 %v3564_v62, %v1994_v22 }
 0x55f   : > { %2214 = vst.msk [vmem:[%s3571_s19 + $0xc8] sm:$0xff] %vm1150_vm0, %v2000_v21 }
 0x560   : > { %2213 = vst.msk [vmem:[%s3571_s19 + $0xc0] sm:$0xff] %vm1150_vm0, %v1995_v3  ;;  %v2830_v23 = vpop.f32.mrb[52].mxu1 }
 0x561   : > { %v2010_v29 = vadd.f32 %v2830_v23, %v3564_v62  ;;  %v2004_v26 = vpop.f32.mrb[53].mxu1 }
 0x562   : > { %v2005_v27 = vadd.f32 %v3564_v62, %v2004_v26 }
 0x563   : > { %2216 = vst.msk [vmem:[%s3571_s19 + $0xd8] sm:$0xff] %vm1150_vm0, %v2010_v29 }
 0x564   : > { %2215 = vst.msk [vmem:[%s3571_s19 + $0xd0] sm:$0xff] %vm1150_vm0, %v2005_v27  ;;  %v2833_v40 = vpop.f32.mrb[54].mxu1 }
 0x565   : > { %v2020_v0 = vadd.f32 %v2833_v40, %v3564_v62  ;;  %v2014_v28 = vpop.f32.mrb[55].mxu1 }
 0x566   : > { %v2015_v30 = vadd.f32 %v3564_v62, %v2014_v28 }
 0x567   : > { %2218 = vst.msk [vmem:[%s3571_s19 + $0xe8] sm:$0xff] %vm1150_vm0, %v2020_v0 }
 0x568   : > { %2217 = vst.msk [vmem:[%s3571_s19 + $0xe0] sm:$0xff] %vm1150_vm0, %v2015_v30  ;;  %v2836_v32 = vpop.f32.mrb[56].mxu1 }
 0x569   : > { %v2030_v31 = vadd.f32 %v2836_v32, %v3564_v62  ;;  %v2024_v6 = vpop.f32.mrb[57].mxu1 }
 0x56a   : > { %v2025_v33 = vadd.f32 %v3564_v62, %v2024_v6 }
 0x56b   : > { %2220 = vst.msk [vmem:[%s3571_s19 + $0xf8] sm:$0xff] %vm1150_vm0, %v2030_v31 }
 0x56c   : > { %2219 = vst.msk [vmem:[%s3571_s19 + $0xf0] sm:$0xff] %vm1150_vm0, %v2025_v33 }
 0x56d PF: > { %s17_s24 = sadd.s32 1, %s3060_s24  }
 0x56e   : > { %p14_p4 = scmp.ge.s32.totalorder %s17_s24, 4  }
 0x570   :  { %16 = sbr.rel (!%p14_p4) target bundleno = 1 (0x1), region = 82 }

</bundles_post_ra>
